<compile_context>
chip_gen: v5e
topology: v5e:2x2
jax: 0.10.0
libtpu: 0.0.40
codegen_flags: <defaults>
</compile_context>

<pallas_src>
import jax
import jax.numpy as jnp
from jax.experimental import pallas as pl
from jax.experimental.pallas import tpu as pltpu

EPS = 1e-6
GATE_LANES = 128          # lanes per LSTM gate (128-aligned)
HID_LANES = 128           # padded hidden width for h / c state
SLOT = 128                # lane width of one packed FC vector slot


def _round_up(n, m):
    return -(-n // m) * m


def _sigmoid(x):
    # Overflow-free logistic on the EUP: sigmoid(x) = 0.5 * (tanh(x/2) + 1).
    return 0.5 * (jnp.tanh(0.5 * x) + 1.0)


def _lstm_cell(xg, h, c, whh):
    """xg: (tb, 4G) precomputed x_t*W_ih + b;  h,c: (tb, HP) f32;  whh: (HP, 4G) bf16."""
    G = GATE_LANES
    gates = xg + jnp.dot(h.astype(whh.dtype), whh, preferred_element_type=jnp.float32)
    i = _sigmoid(gates[:, 0 * G:1 * G])
    f = _sigmoid(gates[:, 1 * G:2 * G])
    g = jnp.tanh(gates[:, 2 * G:3 * G])
    o = _sigmoid(gates[:, 3 * G:4 * G])
    c_new = f * c + i * g
    h_new = o * jnp.tanh(c_new)
    return h_new, c_new


def _layernorm(z, alpha, beta, d):
    """Torch-style LayerNorm on the first `d` lanes of a lane-padded slab.

    Padded lanes of z are exact zeros (zero-padded weights/bias), so the plain lane
    sum gives the correct mean; the variance sum is masked to the real lanes.
    The inverse std uses an exact divide (this is off the serial critical path).
    """
    P = z.shape[-1]
    lane = jax.lax.broadcasted_iota(jnp.int32, (1, P), 1)
    mask = (lane < d).astype(z.dtype)
    avg = jnp.sum(z, axis=-1, keepdims=True) * (1.0 / d)
    diff = (z - avg) * mask
    var = jnp.sum(diff * diff, axis=-1, keepdims=True) * (1.0 / (d - 1))  # unbiased
    inv_std = 1.0 / (jnp.sqrt(var) + EPS)
    return (z - avg) * inv_std * alpha + beta


def lstm_forward(x, h0, c0, params, *, batch_tile=None):
    """x: (B, inc_nodes=1, T); h0/c0: (2, B, H).  Returns (B, 1, out_dim).

    batch_tile: rows per grid step.  Default min(128, round_up(B, 8)).  For large B
    on v6e/v7x use 256; keep B_pad // batch_tile >= 2 on v7x for dual-TC sharding.
    """
    B, inc_nodes, T = x.shape
    assert inc_nodes == 1, "kernel implemented for the default inc_nodes=1"
    H = h0.shape[-1]
    F1 = params['w1'].shape[1]
    F2 = params['w2'].shape[1]
    out_dim = params['w3'].shape[1]

    G = GATE_LANES
    HP = HID_LANES
    assert 0 < H <= HP and 0 < F1 <= SLOT and 0 < F2 <= SLOT and 0 < out_dim <= SLOT
    F1P = _round_up(F1, 128)
    F2P = _round_up(F2, 128)
    OUTP = _round_up(out_dim, 128)

    if batch_tile is None:
        TB = min(128, _round_up(max(B, 8), 8))
    else:
        TB = batch_tile
    assert TB % 8 == 0
    B_pad = _round_up(max(B, TB), TB)
    # two independent recurrence chains when the sub-tiles stay sublane-aligned
    n_chains = 2 if (TB >= 16 and TB % 16 == 0) else 1
    CB = TB // n_chains

    mm_dtype = jnp.bfloat16   # MXU operand dtype; accumulation stays f32

    # ---- pad / relayout activations -------------------------------------------------
    xp = jnp.zeros((B_pad, T), jnp.float32).at[:B].set(x[:, 0, :].astype(jnp.float32))

    # one state slab: lanes [h0_fwd | c0_fwd | h0_bwd | c0_bwd], each HP wide
    st = jnp.zeros((B_pad, 4 * HP), jnp.float32)
    st = st.at[:B, 0 * HP:0 * HP + H].set(h0[0])
    st = st.at[:B, 1 * HP:1 * HP + H].set(c0[0])
    st = st.at[:B, 2 * HP:2 * HP + H].set(h0[1])
    st = st.at[:B, 3 * HP:3 * HP + H].set(c0[1])

    # ---- pad / relayout weights (each gate -> its own 128-lane slab) -----------------
    def pad_gates(w):
        r = w.shape[0]
        w4 = jnp.pad(w.reshape(r, 4, H), ((0, 0), (0, 0), (0, G - H)))
        return w4.reshape(r, 4 * G)

    whh_f = jnp.pad(pad_gates(params['whh_f']), ((0, HP - H), (0, 0)))
    whh_b = jnp.pad(pad_gates(params['whh_b']), ((0, HP - H), (0, 0)))
    whh_all = jnp.concatenate([whh_f, whh_b], axis=0).astype(mm_dtype)   # (2*HP, 4G)

    # one (8, 4G) slab for every small (1, N) vector operand
    V = 4 * G
    vecs = jnp.zeros((8, V), jnp.float32)
    vecs = vecs.at[0, :].set(pad_gates(params['wih_f'])[0])
    vecs = vecs.at[1, :].set(pad_gates(params['b_f'])[0])
    vecs = vecs.at[2, :].set(pad_gates(params['wih_b'])[0])
    vecs = vecs.at[3, :].set(pad_gates(params['b_b'])[0])
    S = SLOT
    vecs = vecs.at[4, 0 * S:0 * S + F1].set(params['b1'].reshape(-1))
    vecs = vecs.at[4, 1 * S:1 * S + F1].set(params['a1'].reshape(-1))
    vecs = vecs.at[4, 2 * S:2 * S + F1].set(params['be1'].reshape(-1))
    vecs = vecs.at[5, 0 * S:0 * S + F2].set(params['b2'].reshape(-1))
    vecs = vecs.at[5, 1 * S:1 * S + F2].set(params['a2'].reshape(-1))
    vecs = vecs.at[5, 2 * S:2 * S + F2].set(params['be2'].reshape(-1))
    vecs = vecs.at[6, 0 * S:0 * S + out_dim].set(params['b3'].reshape(-1))

    # FC1: rows split so fwd hidden feeds rows [0,HP) and bwd hidden feeds [HP,2HP).
    w1 = params['w1']                                                   # (2H, F1)
    w1p = (jnp.zeros((2 * HP, F1P), jnp.float32)
           .at[:H, :F1].set(w1[:H])
           .at[HP:HP + H, :F1].set(w1[H:2 * H])).astype(mm_dtype)
    w2p = (jnp.zeros((F1P, F2P), jnp.float32)
           .at[:F1, :F2].set(params['w2'])).astype(mm_dtype)
    w3p = (jnp.zeros((F2P, OUTP), jnp.float32)
           .at[:F2, :out_dim].set(params['w3'])).astype(mm_dtype)

    # ---- kernel ----------------------------------------------------------------------
    def kernel(x_ref, st_ref, whh_ref, vec_ref, w1_ref, w2_ref, w3_ref,
               out_ref, xg_ref):
        x_blk = x_ref[...]                                  # (TB, T)  f32
        vec = vec_ref[...]                                  # (8, 4G)  f32
        wih_fw, b_fw = vec[0:1, :], vec[1:2, :]
        wih_bw, b_bw = vec[2:3, :], vec[3:4, :]
        b1, a1, be1 = vec[4:5, 0:S], vec[4:5, S:2 * S], vec[4:5, 2 * S:3 * S]
        b2, a2, be2 = vec[5:6, 0:S], vec[5:6, S:2 * S], vec[5:6, 2 * S:3 * S]
        b3 = vec[6:7, 0:S]

        whh_fw = whh_ref[0:HP, :]                           # (HP, 4G) bf16
        whh_bw = whh_ref[HP:2 * HP, :]
        state = st_ref[...]                                 # (TB, 4*HP) f32

        # Hoisted input-gate contributions written to VMEM scratch (one slice is
        # loaded per recurrence step -> no vreg pressure, vld slot is free in-loop).
        for t in range(T):
            xg_ref[t * TB:(t + 1) * TB, :] = x_blk[:, t:t + 1] * wih_fw + b_fw

        # ---- backward direction: output[:, -1, H:] == one step on x[:, -1] ----
        # Independent chain, issued alongside the forward scan.
        xg_bw = x_blk[:, T - 1:T] * wih_bw + b_bw
        h_bwd, _ = _lstm_cell(xg_bw, state[:, 2 * HP:3 * HP],
                              state[:, 3 * HP:4 * HP], whh_bw)

        # ---- forward direction: full scan over T, two batch sub-tile chains ----
        chains = []
        for ci in range(n_chains):
            rows = slice(ci * CB, (ci + 1) * CB)
            chains.append((state[rows, 0 * HP:1 * HP], state[rows, 1 * HP:2 * HP]))
        for t in range(T):
            nxt = []
            for ci in range(n_chains):
                h, c = chains[ci]
                xg = xg_ref[t * TB + ci * CB:t * TB + (ci + 1) * CB, :]
                nxt.append(_lstm_cell(xg, h, c, whh_fw))
            chains = nxt
        if n_chains == 1:
            h_fwd = chains[0][0]
        else:
            h_fwd = jnp.concatenate([hc[0] for hc in chains], axis=0)

        # ---- FeedForward (model_version='advanced') ----
        # Two K=128 dots instead of a (TB, 256) lane concat.
        mmdt = w1_ref.dtype
        z = (jnp.dot(h_fwd.astype(mmdt), w1_ref[0:HP, :],
                     preferred_element_type=jnp.float32)
             + jnp.dot(h_bwd.astype(mmdt), w1_ref[HP:2 * HP, :],
                       preferred_element_type=jnp.float32)
             + b1)
        z = z + _layernorm(z, a1, be1, F1)
        z = jnp.maximum(z, 0.0)

        z = (jnp.dot(z.astype(mmdt), w2_ref[...],
                     preferred_element_type=jnp.float32) + b2)
        z = z + _layernorm(z, a2, be2, F2)
        z = jnp.maximum(z, 0.0)

        out_ref[...] = (jnp.dot(z.astype(mmdt), w3_ref[...],
                                preferred_element_type=jnp.float32) + b3)

    def bspec(cols):   # batch-tiled blocks
        return pl.BlockSpec((TB, cols), lambda i: (i, 0))

    def wspec(shape):  # full-array weight blocks (same block every grid step)
        return pl.BlockSpec(shape, lambda i: (0, 0))

    grid = (B_pad // TB,)
    in_specs = [
        bspec(T),                   # x
        bspec(4 * HP),              # packed h0/c0 state
        wspec((2 * HP, 4 * G)),     # W_hh fwd|bwd
        wspec((8, 4 * G)),          # packed small vectors
        wspec((2 * HP, F1P)),       # W1 (fwd rows | bwd rows)
        wspec((F1P, F2P)),          # W2
        wspec((F2P, OUTP)),         # W3
    ]

    out = pl.pallas_call(
        kernel,
        out_shape=jax.ShapeDtypeStruct((B_pad, OUTP), jnp.float32),
        grid_spec=pltpu.PrefetchScalarGridSpec(
            num_scalar_prefetch=0,
            grid=grid,
            in_specs=in_specs,
            out_specs=bspec(OUTP),
            scratch_shapes=[pltpu.VMEM((T * TB, 4 * G), jnp.float32)]),
        compiler_params=pltpu.CompilerParams(
            dimension_semantics=("parallel",)),
    )(xp, st, whh_all, vecs, w1p, w2p, w3p)

    return out[:B, :out_dim].reshape(B, 1, out_dim)


def init_params(key, H=24, fc_hidden=(32, 32), out_dim=24):
    """Deterministic synthetic parameters (PyTorch shapes, stored transposed for x @ W)."""
    D = 2
    dims = [D * H] + list(fc_hidden) + [out_dim]
    keys = list(jax.random.split(key, 32))
    ki = iter(keys)

    def lin(k, fan_in, shape):
        bound = 1.0 / jnp.sqrt(jnp.float32(fan_in))
        return jax.random.uniform(k, shape, jnp.float32, -bound, bound)

    p = {}
    # LSTM weights (torch: W_ih (4H,1), W_hh (4H,H), b_ih/b_hh (4H,)); gate order i,f,g,o.
    for tag in ('f', 'b'):
        p['wih_' + tag] = lin(next(ki), H, (1, 4 * H))
        p['whh_' + tag] = lin(next(ki), H, (H, 4 * H))
        b_ih = lin(next(ki), H, (1, 4 * H))
        b_hh = lin(next(ki), H, (1, 4 * H))
        p['b_' + tag] = b_ih + b_hh
    # FeedForward linears (torch Linear weight is (out,in); stored transposed) + LayerNorm params.
    p['w1'] = lin(next(ki), dims[0], (dims[0], dims[1]))
    p['b1'] = lin(next(ki), dims[0], (1, dims[1]))
    p['a1'] = jax.random.normal(next(ki), (1, dims[1]), jnp.float32)
    p['be1'] = jax.random.normal(next(ki), (1, dims[1]), jnp.float32)
    p['w2'] = lin(next(ki), dims[1], (dims[1], dims[2]))
    p['b2'] = lin(next(ki), dims[1], (1, dims[2]))
    p['a2'] = jax.random.normal(next(ki), (1, dims[2]), jnp.float32)
    p['be2'] = jax.random.normal(next(ki), (1, dims[2]), jnp.float32)
    p['w3'] = lin(next(ki), dims[2], (dims[2], dims[3]))
    p['b3'] = lin(next(ki), dims[2], (1, dims[3]))
    return p


if __name__ == "__main__":
    B, inc_nodes, T = 2, 1, 8
    H, out_dim = 24, 24

    key = jax.random.PRNGKey(0)
    kx, kh, kc, kp, kx2, kh2, kc2 = jax.random.split(key, 7)

    x = jax.random.normal(kx, (B, inc_nodes, T), jnp.float32)
    # torch.randn(D*num_layers, len(x), H) in the module's forward, made deterministic here.
    h0 = jax.random.normal(kh, (2, B, H), jnp.float32)
    c0 = jax.random.normal(kc, (2, B, H), jnp.float32)
    params = init_params(kp, H=H, fc_hidden=(32, 32), out_dim=out_dim)

    out = lstm_forward(x, h0, c0, params)
    jax.block_until_ready(out)
    assert out.shape == (B, 1, out_dim)
    assert bool(jnp.all(jnp.isfinite(out)))

    # Second call exercising the batch-padded, multi-grid-step, dual-chain path.
    B2 = 24
    x2 = jax.random.normal(kx2, (B2, inc_nodes, T), jnp.float32)
    h02 = jax.random.normal(kh2, (2, B2, H), jnp.float32)
    c02 = jax.random.normal(kc2, (2, B2, H), jnp.float32)
    out2 = lstm_forward(x2, h02, c02, params, batch_tile=16)
    jax.block_until_ready(out2)
    assert out2.shape == (B2, 1, out_dim)
    assert bool(jnp.all(jnp.isfinite(out2)))

    print("KERNEL_OK")
</pallas_src>

<mosaic_0001>
module attributes {stable_mosaic.version = 11 : i64} {
  func.func @kernel(%arg0: i32, %arg1: memref<8x8xf32, #tpu.memory_space<vmem>>, %arg2: memref<8x512xf32, #tpu.memory_space<vmem>>, %arg3: memref<256x512xbf16, #tpu.memory_space<vmem>>, %arg4: memref<8x512xf32, #tpu.memory_space<vmem>>, %arg5: memref<256x128xbf16, #tpu.memory_space<vmem>>, %arg6: memref<128x128xbf16, #tpu.memory_space<vmem>>, %arg7: memref<128x128xbf16, #tpu.memory_space<vmem>>, %arg8: memref<8x128xf32, #tpu.memory_space<vmem>>, %arg9: memref<64x512xf32, #tpu.memory_space<vmem>>) attributes {dimension_semantics = [#tpu.dimension_semantics<parallel>], iteration_bounds = array<i64: 1>, scalar_prefetch = 0 : i64, scratch_operands = 1 : i64, tpu.core_type = #tpu.core_type<tc>, window_params = [{transform_indices = @transform_0, window_bounds = array<i64: 8, 8>}, {transform_indices = @transform_1, window_bounds = array<i64: 8, 512>}, {pipeline_mode = #tpu.pipeline_mode<synchronous>, transform_indices = @transform_2, window_bounds = array<i64: 256, 512>}, {pipeline_mode = #tpu.pipeline_mode<synchronous>, transform_indices = @transform_3, window_bounds = array<i64: 8, 512>}, {pipeline_mode = #tpu.pipeline_mode<synchronous>, transform_indices = @transform_4, window_bounds = array<i64: 256, 128>}, {pipeline_mode = #tpu.pipeline_mode<synchronous>, transform_indices = @transform_5, window_bounds = array<i64: 128, 128>}, {pipeline_mode = #tpu.pipeline_mode<synchronous>, transform_indices = @transform_6, window_bounds = array<i64: 128, 128>}, {transform_indices = @transform_7, window_bounds = array<i64: 8, 128>}]} {
    %c0 = arith.constant 0 : index
    %c0_0 = arith.constant 0 : index
    %0 = vector.load %arg1[%c0, %c0_0] : memref<8x8xf32, #tpu.memory_space<vmem>>, vector<8x8xf32>
    %c0_1 = arith.constant 0 : index
    %c0_2 = arith.constant 0 : index
    %1 = vector.load %arg4[%c0_1, %c0_2] : memref<8x512xf32, #tpu.memory_space<vmem>>, vector<8x512xf32>
    %2 = vector.extract_strided_slice %1 {offsets = [0, 0], sizes = [1, 512], strides = [1, 1]} : vector<8x512xf32> to vector<1x512xf32>
    %3 = vector.extract_strided_slice %1 {offsets = [1, 0], sizes = [1, 512], strides = [1, 1]} : vector<8x512xf32> to vector<1x512xf32>
    %4 = vector.extract_strided_slice %1 {offsets = [2, 0], sizes = [1, 512], strides = [1, 1]} : vector<8x512xf32> to vector<1x512xf32>
    %5 = vector.extract_strided_slice %1 {offsets = [3, 0], sizes = [1, 512], strides = [1, 1]} : vector<8x512xf32> to vector<1x512xf32>
    %6 = vector.extract_strided_slice %1 {offsets = [4, 0], sizes = [1, 128], strides = [1, 1]} : vector<8x512xf32> to vector<1x128xf32>
    %7 = vector.extract_strided_slice %1 {offsets = [4, 128], sizes = [1, 128], strides = [1, 1]} : vector<8x512xf32> to vector<1x128xf32>
    %8 = vector.extract_strided_slice %1 {offsets = [4, 256], sizes = [1, 128], strides = [1, 1]} : vector<8x512xf32> to vector<1x128xf32>
    %9 = vector.extract_strided_slice %1 {offsets = [5, 0], sizes = [1, 128], strides = [1, 1]} : vector<8x512xf32> to vector<1x128xf32>
    %10 = vector.extract_strided_slice %1 {offsets = [5, 128], sizes = [1, 128], strides = [1, 1]} : vector<8x512xf32> to vector<1x128xf32>
    %11 = vector.extract_strided_slice %1 {offsets = [5, 256], sizes = [1, 128], strides = [1, 1]} : vector<8x512xf32> to vector<1x128xf32>
    %12 = vector.extract_strided_slice %1 {offsets = [6, 0], sizes = [1, 128], strides = [1, 1]} : vector<8x512xf32> to vector<1x128xf32>
    %c0_3 = arith.constant 0 : index
    %c0_4 = arith.constant 0 : index
    %13 = vector.load %arg3[%c0_3, %c0_4] : memref<256x512xbf16, #tpu.memory_space<vmem>>, vector<128x512xbf16>
    %c128 = arith.constant 128 : index
    %c0_5 = arith.constant 0 : index
    %14 = vector.load %arg3[%c128, %c0_5] : memref<256x512xbf16, #tpu.memory_space<vmem>>, vector<128x512xbf16>
    %c0_6 = arith.constant 0 : index
    %c0_7 = arith.constant 0 : index
    %15 = vector.load %arg2[%c0_6, %c0_7] : memref<8x512xf32, #tpu.memory_space<vmem>>, vector<8x512xf32>
    %16 = vector.extract_strided_slice %0 {offsets = [0, 0], sizes = [8, 1], strides = [1, 1]} : vector<8x8xf32> to vector<8x1xf32>
    %17 = vector.broadcast %16 : vector<8x1xf32> to vector<8x512xf32>
    %18 = vector.broadcast %2 : vector<1x512xf32> to vector<8x512xf32>
    %19 = arith.mulf %17, %18 : vector<8x512xf32>
    %20 = vector.broadcast %3 : vector<1x512xf32> to vector<8x512xf32>
    %21 = arith.addf %19, %20 : vector<8x512xf32>
    %c0_8 = arith.constant 0 : index
    %c0_9 = arith.constant 0 : index
    %22 = vector.load %arg9[%c0_8, %c0_9] : memref<64x512xf32, #tpu.memory_space<vmem>>, vector<8x512xf32>
    tpu.vector_store %arg9[%c0_8, %c0_9], %21 {strides = array<i32>} : memref<64x512xf32, #tpu.memory_space<vmem>>, vector<8x512xf32>,
    %23 = vector.extract_strided_slice %0 {offsets = [0, 1], sizes = [8, 1], strides = [1, 1]} : vector<8x8xf32> to vector<8x1xf32>
    %24 = vector.broadcast %23 : vector<8x1xf32> to vector<8x512xf32>
    %25 = vector.broadcast %2 : vector<1x512xf32> to vector<8x512xf32>
    %26 = arith.mulf %24, %25 : vector<8x512xf32>
    %27 = vector.broadcast %3 : vector<1x512xf32> to vector<8x512xf32>
    %28 = arith.addf %26, %27 : vector<8x512xf32>
    %c8 = arith.constant 8 : index
    %c0_10 = arith.constant 0 : index
    %29 = vector.load %arg9[%c8, %c0_10] : memref<64x512xf32, #tpu.memory_space<vmem>>, vector<8x512xf32>
    tpu.vector_store %arg9[%c8, %c0_10], %28 {strides = array<i32>} : memref<64x512xf32, #tpu.memory_space<vmem>>, vector<8x512xf32>,
    %30 = vector.extract_strided_slice %0 {offsets = [0, 2], sizes = [8, 1], strides = [1, 1]} : vector<8x8xf32> to vector<8x1xf32>
    %31 = vector.broadcast %30 : vector<8x1xf32> to vector<8x512xf32>
    %32 = vector.broadcast %2 : vector<1x512xf32> to vector<8x512xf32>
    %33 = arith.mulf %31, %32 : vector<8x512xf32>
    %34 = vector.broadcast %3 : vector<1x512xf32> to vector<8x512xf32>
    %35 = arith.addf %33, %34 : vector<8x512xf32>
    %c16 = arith.constant 16 : index
    %c0_11 = arith.constant 0 : index
    %36 = vector.load %arg9[%c16, %c0_11] : memref<64x512xf32, #tpu.memory_space<vmem>>, vector<8x512xf32>
    tpu.vector_store %arg9[%c16, %c0_11], %35 {strides = array<i32>} : memref<64x512xf32, #tpu.memory_space<vmem>>, vector<8x512xf32>,
    %37 = vector.extract_strided_slice %0 {offsets = [0, 3], sizes = [8, 1], strides = [1, 1]} : vector<8x8xf32> to vector<8x1xf32>
    %38 = vector.broadcast %37 : vector<8x1xf32> to vector<8x512xf32>
    %39 = vector.broadcast %2 : vector<1x512xf32> to vector<8x512xf32>
    %40 = arith.mulf %38, %39 : vector<8x512xf32>
    %41 = vector.broadcast %3 : vector<1x512xf32> to vector<8x512xf32>
    %42 = arith.addf %40, %41 : vector<8x512xf32>
    %c24 = arith.constant 24 : index
    %c0_12 = arith.constant 0 : index
    %43 = vector.load %arg9[%c24, %c0_12] : memref<64x512xf32, #tpu.memory_space<vmem>>, vector<8x512xf32>
    tpu.vector_store %arg9[%c24, %c0_12], %42 {strides = array<i32>} : memref<64x512xf32, #tpu.memory_space<vmem>>, vector<8x512xf32>,
    %44 = vector.extract_strided_slice %0 {offsets = [0, 4], sizes = [8, 1], strides = [1, 1]} : vector<8x8xf32> to vector<8x1xf32>
    %45 = vector.broadcast %44 : vector<8x1xf32> to vector<8x512xf32>
    %46 = vector.broadcast %2 : vector<1x512xf32> to vector<8x512xf32>
    %47 = arith.mulf %45, %46 : vector<8x512xf32>
    %48 = vector.broadcast %3 : vector<1x512xf32> to vector<8x512xf32>
    %49 = arith.addf %47, %48 : vector<8x512xf32>
    %c32 = arith.constant 32 : index
    %c0_13 = arith.constant 0 : index
    %50 = vector.load %arg9[%c32, %c0_13] : memref<64x512xf32, #tpu.memory_space<vmem>>, vector<8x512xf32>
    tpu.vector_store %arg9[%c32, %c0_13], %49 {strides = array<i32>} : memref<64x512xf32, #tpu.memory_space<vmem>>, vector<8x512xf32>,
    %51 = vector.extract_strided_slice %0 {offsets = [0, 5], sizes = [8, 1], strides = [1, 1]} : vector<8x8xf32> to vector<8x1xf32>
    %52 = vector.broadcast %51 : vector<8x1xf32> to vector<8x512xf32>
    %53 = vector.broadcast %2 : vector<1x512xf32> to vector<8x512xf32>
    %54 = arith.mulf %52, %53 : vector<8x512xf32>
    %55 = vector.broadcast %3 : vector<1x512xf32> to vector<8x512xf32>
    %56 = arith.addf %54, %55 : vector<8x512xf32>
    %c40 = arith.constant 40 : index
    %c0_14 = arith.constant 0 : index
    %57 = vector.load %arg9[%c40, %c0_14] : memref<64x512xf32, #tpu.memory_space<vmem>>, vector<8x512xf32>
    tpu.vector_store %arg9[%c40, %c0_14], %56 {strides = array<i32>} : memref<64x512xf32, #tpu.memory_space<vmem>>, vector<8x512xf32>,
    %58 = vector.extract_strided_slice %0 {offsets = [0, 6], sizes = [8, 1], strides = [1, 1]} : vector<8x8xf32> to vector<8x1xf32>
    %59 = vector.broadcast %58 : vector<8x1xf32> to vector<8x512xf32>
    %60 = vector.broadcast %2 : vector<1x512xf32> to vector<8x512xf32>
    %61 = arith.mulf %59, %60 : vector<8x512xf32>
    %62 = vector.broadcast %3 : vector<1x512xf32> to vector<8x512xf32>
    %63 = arith.addf %61, %62 : vector<8x512xf32>
    %c48 = arith.constant 48 : index
    %c0_15 = arith.constant 0 : index
    %64 = vector.load %arg9[%c48, %c0_15] : memref<64x512xf32, #tpu.memory_space<vmem>>, vector<8x512xf32>
    tpu.vector_store %arg9[%c48, %c0_15], %63 {strides = array<i32>} : memref<64x512xf32, #tpu.memory_space<vmem>>, vector<8x512xf32>,
    %65 = vector.extract_strided_slice %0 {offsets = [0, 7], sizes = [8, 1], strides = [1, 1]} : vector<8x8xf32> to vector<8x1xf32>
    %66 = vector.broadcast %65 : vector<8x1xf32> to vector<8x512xf32>
    %67 = vector.broadcast %2 : vector<1x512xf32> to vector<8x512xf32>
    %68 = arith.mulf %66, %67 : vector<8x512xf32>
    %69 = vector.broadcast %3 : vector<1x512xf32> to vector<8x512xf32>
    %70 = arith.addf %68, %69 : vector<8x512xf32>
    %c56 = arith.constant 56 : index
    %c0_16 = arith.constant 0 : index
    %71 = vector.load %arg9[%c56, %c0_16] : memref<64x512xf32, #tpu.memory_space<vmem>>, vector<8x512xf32>
    tpu.vector_store %arg9[%c56, %c0_16], %70 {strides = array<i32>} : memref<64x512xf32, #tpu.memory_space<vmem>>, vector<8x512xf32>,
    %72 = vector.extract_strided_slice %0 {offsets = [0, 7], sizes = [8, 1], strides = [1, 1]} : vector<8x8xf32> to vector<8x1xf32>
    %73 = vector.broadcast %72 : vector<8x1xf32> to vector<8x512xf32>
    %74 = vector.broadcast %4 : vector<1x512xf32> to vector<8x512xf32>
    %75 = arith.mulf %73, %74 : vector<8x512xf32>
    %76 = vector.broadcast %5 : vector<1x512xf32> to vector<8x512xf32>
    %77 = arith.addf %75, %76 : vector<8x512xf32>
    %78 = vector.extract_strided_slice %15 {offsets = [0, 256], sizes = [8, 128], strides = [1, 1]} : vector<8x512xf32> to vector<8x128xf32>
    %79 = vector.extract_strided_slice %15 {offsets = [0, 384], sizes = [8, 128], strides = [1, 1]} : vector<8x512xf32> to vector<8x128xf32>
    %80 = arith.truncf %78 : vector<8x128xf32> to vector<8x128xbf16>
    %cst = arith.constant dense<0.000000e+00> : vector<8x512xf32>
    %81 = tpu.matmul %80, %14, %cst {dimension_numbers = #tpu.dot_dimension_numbers<[1], [0], [0], [1], [0, 0, 1, 1], [], []>} : vector<8x128xbf16>, vector<128x512xbf16>, vector<8x512xf32> -> vector<8x512xf32>
    %82 = arith.addf %77, %81 : vector<8x512xf32>
    %83 = vector.extract_strided_slice %82 {offsets = [0, 0], sizes = [8, 128], strides = [1, 1]} : vector<8x512xf32> to vector<8x128xf32>
    %cst_17 = arith.constant 5.000000e-01 : f32
    %84 = vector.broadcast %cst_17 : f32 to vector<8x128xf32>
    %85 = arith.mulf %84, %83 : vector<8x128xf32>
    %86 = math.tanh %85 : vector<8x128xf32>
    %cst_18 = arith.constant 1.000000e+00 : f32
    %87 = vector.broadcast %cst_18 : f32 to vector<8x128xf32>
    %88 = arith.addf %86, %87 : vector<8x128xf32>
    %cst_19 = arith.constant 5.000000e-01 : f32
    %89 = vector.broadcast %cst_19 : f32 to vector<8x128xf32>
    %90 = arith.mulf %89, %88 : vector<8x128xf32>
    %91 = vector.extract_strided_slice %82 {offsets = [0, 128], sizes = [8, 128], strides = [1, 1]} : vector<8x512xf32> to vector<8x128xf32>
    %cst_20 = arith.constant 5.000000e-01 : f32
    %92 = vector.broadcast %cst_20 : f32 to vector<8x128xf32>
    %93 = arith.mulf %92, %91 : vector<8x128xf32>
    %94 = math.tanh %93 : vector<8x128xf32>
    %cst_21 = arith.constant 1.000000e+00 : f32
    %95 = vector.broadcast %cst_21 : f32 to vector<8x128xf32>
    %96 = arith.addf %94, %95 : vector<8x128xf32>
    %cst_22 = arith.constant 5.000000e-01 : f32
    %97 = vector.broadcast %cst_22 : f32 to vector<8x128xf32>
    %98 = arith.mulf %97, %96 : vector<8x128xf32>
    %99 = vector.extract_strided_slice %82 {offsets = [0, 256], sizes = [8, 128], strides = [1, 1]} : vector<8x512xf32> to vector<8x128xf32>
    %100 = math.tanh %99 : vector<8x128xf32>
    %101 = vector.extract_strided_slice %82 {offsets = [0, 384], sizes = [8, 128], strides = [1, 1]} : vector<8x512xf32> to vector<8x128xf32>
    %cst_23 = arith.constant 5.000000e-01 : f32
    %102 = vector.broadcast %cst_23 : f32 to vector<8x128xf32>
    %103 = arith.mulf %102, %101 : vector<8x128xf32>
    %104 = math.tanh %103 : vector<8x128xf32>
    %cst_24 = arith.constant 1.000000e+00 : f32
    %105 = vector.broadcast %cst_24 : f32 to vector<8x128xf32>
    %106 = arith.addf %104, %105 : vector<8x128xf32>
    %cst_25 = arith.constant 5.000000e-01 : f32
    %107 = vector.broadcast %cst_25 : f32 to vector<8x128xf32>
    %108 = arith.mulf %107, %106 : vector<8x128xf32>
    %109 = arith.mulf %98, %79 : vector<8x128xf32>
    %110 = arith.mulf %90, %100 : vector<8x128xf32>
    %111 = arith.addf %109, %110 : vector<8x128xf32>
    %112 = math.tanh %111 : vector<8x128xf32>
    %113 = arith.mulf %108, %112 : vector<8x128xf32>
    %114 = vector.extract_strided_slice %15 {offsets = [0, 0], sizes = [8, 128], strides = [1, 1]} : vector<8x512xf32> to vector<8x128xf32>
    %115 = vector.extract_strided_slice %15 {offsets = [0, 128], sizes = [8, 128], strides = [1, 1]} : vector<8x512xf32> to vector<8x128xf32>
    %c0_26 = arith.constant 0 : index
    %c0_27 = arith.constant 0 : index
    %116 = vector.load %arg9[%c0_26, %c0_27] : memref<64x512xf32, #tpu.memory_space<vmem>>, vector<8x512xf32>
    %117 = arith.truncf %114 : vector<8x128xf32> to vector<8x128xbf16>
    %cst_28 = arith.constant dense<0.000000e+00> : vector<8x512xf32>
    %118 = tpu.matmul %117, %13, %cst_28 {dimension_numbers = #tpu.dot_dimension_numbers<[1], [0], [0], [1], [0, 0, 1, 1], [], []>} : vector<8x128xbf16>, vector<128x512xbf16>, vector<8x512xf32> -> vector<8x512xf32>
    %119 = arith.addf %116, %118 : vector<8x512xf32>
    %120 = vector.extract_strided_slice %119 {offsets = [0, 0], sizes = [8, 128], strides = [1, 1]} : vector<8x512xf32> to vector<8x128xf32>
    %cst_29 = arith.constant 5.000000e-01 : f32
    %121 = vector.broadcast %cst_29 : f32 to vector<8x128xf32>
    %122 = arith.mulf %121, %120 : vector<8x128xf32>
    %123 = math.tanh %122 : vector<8x128xf32>
    %cst_30 = arith.constant 1.000000e+00 : f32
    %124 = vector.broadcast %cst_30 : f32 to vector<8x128xf32>
    %125 = arith.addf %123, %124 : vector<8x128xf32>
    %cst_31 = arith.constant 5.000000e-01 : f32
    %126 = vector.broadcast %cst_31 : f32 to vector<8x128xf32>
    %127 = arith.mulf %126, %125 : vector<8x128xf32>
    %128 = vector.extract_strided_slice %119 {offsets = [0, 128], sizes = [8, 128], strides = [1, 1]} : vector<8x512xf32> to vector<8x128xf32>
    %cst_32 = arith.constant 5.000000e-01 : f32
    %129 = vector.broadcast %cst_32 : f32 to vector<8x128xf32>
    %130 = arith.mulf %129, %128 : vector<8x128xf32>
    %131 = math.tanh %130 : vector<8x128xf32>
    %cst_33 = arith.constant 1.000000e+00 : f32
    %132 = vector.broadcast %cst_33 : f32 to vector<8x128xf32>
    %133 = arith.addf %131, %132 : vector<8x128xf32>
    %cst_34 = arith.constant 5.000000e-01 : f32
    %134 = vector.broadcast %cst_34 : f32 to vector<8x128xf32>
    %135 = arith.mulf %134, %133 : vector<8x128xf32>
    %136 = vector.extract_strided_slice %119 {offsets = [0, 256], sizes = [8, 128], strides = [1, 1]} : vector<8x512xf32> to vector<8x128xf32>
    %137 = math.tanh %136 : vector<8x128xf32>
    %138 = vector.extract_strided_slice %119 {offsets = [0, 384], sizes = [8, 128], strides = [1, 1]} : vector<8x512xf32> to vector<8x128xf32>
    %cst_35 = arith.constant 5.000000e-01 : f32
    %139 = vector.broadcast %cst_35 : f32 to vector<8x128xf32>
    %140 = arith.mulf %139, %138 : vector<8x128xf32>
    %141 = math.tanh %140 : vector<8x128xf32>
    %cst_36 = arith.constant 1.000000e+00 : f32
    %142 = vector.broadcast %cst_36 : f32 to vector<8x128xf32>
    %143 = arith.addf %141, %142 : vector<8x128xf32>
    %cst_37 = arith.constant 5.000000e-01 : f32
    %144 = vector.broadcast %cst_37 : f32 to vector<8x128xf32>
    %145 = arith.mulf %144, %143 : vector<8x128xf32>
    %146 = arith.mulf %135, %115 : vector<8x128xf32>
    %147 = arith.mulf %127, %137 : vector<8x128xf32>
    %148 = arith.addf %146, %147 : vector<8x128xf32>
    %149 = math.tanh %148 : vector<8x128xf32>
    %150 = arith.mulf %145, %149 : vector<8x128xf32>
    %c8_38 = arith.constant 8 : index
    %c0_39 = arith.constant 0 : index
    %151 = vector.load %arg9[%c8_38, %c0_39] : memref<64x512xf32, #tpu.memory_space<vmem>>, vector<8x512xf32>
    %152 = arith.truncf %150 : vector<8x128xf32> to vector<8x128xbf16>
    %cst_40 = arith.constant dense<0.000000e+00> : vector<8x512xf32>
    %153 = tpu.matmul %152, %13, %cst_40 {dimension_numbers = #tpu.dot_dimension_numbers<[1], [0], [0], [1], [0, 0, 1, 1], [], []>} : vector<8x128xbf16>, vector<128x512xbf16>, vector<8x512xf32> -> vector<8x512xf32>
    %154 = arith.addf %151, %153 : vector<8x512xf32>
    %155 = vector.extract_strided_slice %154 {offsets = [0, 0], sizes = [8, 128], strides = [1, 1]} : vector<8x512xf32> to vector<8x128xf32>
    %cst_41 = arith.constant 5.000000e-01 : f32
    %156 = vector.broadcast %cst_41 : f32 to vector<8x128xf32>
    %157 = arith.mulf %156, %155 : vector<8x128xf32>
    %158 = math.tanh %157 : vector<8x128xf32>
    %cst_42 = arith.constant 1.000000e+00 : f32
    %159 = vector.broadcast %cst_42 : f32 to vector<8x128xf32>
    %160 = arith.addf %158, %159 : vector<8x128xf32>
    %cst_43 = arith.constant 5.000000e-01 : f32
    %161 = vector.broadcast %cst_43 : f32 to vector<8x128xf32>
    %162 = arith.mulf %161, %160 : vector<8x128xf32>
    %163 = vector.extract_strided_slice %154 {offsets = [0, 128], sizes = [8, 128], strides = [1, 1]} : vector<8x512xf32> to vector<8x128xf32>
    %cst_44 = arith.constant 5.000000e-01 : f32
    %164 = vector.broadcast %cst_44 : f32 to vector<8x128xf32>
    %165 = arith.mulf %164, %163 : vector<8x128xf32>
    %166 = math.tanh %165 : vector<8x128xf32>
    %cst_45 = arith.constant 1.000000e+00 : f32
    %167 = vector.broadcast %cst_45 : f32 to vector<8x128xf32>
    %168 = arith.addf %166, %167 : vector<8x128xf32>
    %cst_46 = arith.constant 5.000000e-01 : f32
    %169 = vector.broadcast %cst_46 : f32 to vector<8x128xf32>
    %170 = arith.mulf %169, %168 : vector<8x128xf32>
    %171 = vector.extract_strided_slice %154 {offsets = [0, 256], sizes = [8, 128], strides = [1, 1]} : vector<8x512xf32> to vector<8x128xf32>
    %172 = math.tanh %171 : vector<8x128xf32>
    %173 = vector.extract_strided_slice %154 {offsets = [0, 384], sizes = [8, 128], strides = [1, 1]} : vector<8x512xf32> to vector<8x128xf32>
    %cst_47 = arith.constant 5.000000e-01 : f32
    %174 = vector.broadcast %cst_47 : f32 to vector<8x128xf32>
    %175 = arith.mulf %174, %173 : vector<8x128xf32>
    %176 = math.tanh %175 : vector<8x128xf32>
    %cst_48 = arith.constant 1.000000e+00 : f32
    %177 = vector.broadcast %cst_48 : f32 to vector<8x128xf32>
    %178 = arith.addf %176, %177 : vector<8x128xf32>
    %cst_49 = arith.constant 5.000000e-01 : f32
    %179 = vector.broadcast %cst_49 : f32 to vector<8x128xf32>
    %180 = arith.mulf %179, %178 : vector<8x128xf32>
    %181 = arith.mulf %170, %148 : vector<8x128xf32>
    %182 = arith.mulf %162, %172 : vector<8x128xf32>
    %183 = arith.addf %181, %182 : vector<8x128xf32>
    %184 = math.tanh %183 : vector<8x128xf32>
    %185 = arith.mulf %180, %184 : vector<8x128xf32>
    %c16_50 = arith.constant 16 : index
    %c0_51 = arith.constant 0 : index
    %186 = vector.load %arg9[%c16_50, %c0_51] : memref<64x512xf32, #tpu.memory_space<vmem>>, vector<8x512xf32>
    %187 = arith.truncf %185 : vector<8x128xf32> to vector<8x128xbf16>
    %cst_52 = arith.constant dense<0.000000e+00> : vector<8x512xf32>
    %188 = tpu.matmul %187, %13, %cst_52 {dimension_numbers = #tpu.dot_dimension_numbers<[1], [0], [0], [1], [0, 0, 1, 1], [], []>} : vector<8x128xbf16>, vector<128x512xbf16>, vector<8x512xf32> -> vector<8x512xf32>
    %189 = arith.addf %186, %188 : vector<8x512xf32>
    %190 = vector.extract_strided_slice %189 {offsets = [0, 0], sizes = [8, 128], strides = [1, 1]} : vector<8x512xf32> to vector<8x128xf32>
    %cst_53 = arith.constant 5.000000e-01 : f32
    %191 = vector.broadcast %cst_53 : f32 to vector<8x128xf32>
    %192 = arith.mulf %191, %190 : vector<8x128xf32>
    %193 = math.tanh %192 : vector<8x128xf32>
    %cst_54 = arith.constant 1.000000e+00 : f32
    %194 = vector.broadcast %cst_54 : f32 to vector<8x128xf32>
    %195 = arith.addf %193, %194 : vector<8x128xf32>
    %cst_55 = arith.constant 5.000000e-01 : f32
    %196 = vector.broadcast %cst_55 : f32 to vector<8x128xf32>
    %197 = arith.mulf %196, %195 : vector<8x128xf32>
    %198 = vector.extract_strided_slice %189 {offsets = [0, 128], sizes = [8, 128], strides = [1, 1]} : vector<8x512xf32> to vector<8x128xf32>
    %cst_56 = arith.constant 5.000000e-01 : f32
    %199 = vector.broadcast %cst_56 : f32 to vector<8x128xf32>
    %200 = arith.mulf %199, %198 : vector<8x128xf32>
    %201 = math.tanh %200 : vector<8x128xf32>
    %cst_57 = arith.constant 1.000000e+00 : f32
    %202 = vector.broadcast %cst_57 : f32 to vector<8x128xf32>
    %203 = arith.addf %201, %202 : vector<8x128xf32>
    %cst_58 = arith.constant 5.000000e-01 : f32
    %204 = vector.broadcast %cst_58 : f32 to vector<8x128xf32>
    %205 = arith.mulf %204, %203 : vector<8x128xf32>
    %206 = vector.extract_strided_slice %189 {offsets = [0, 256], sizes = [8, 128], strides = [1, 1]} : vector<8x512xf32> to vector<8x128xf32>
    %207 = math.tanh %206 : vector<8x128xf32>
    %208 = vector.extract_strided_slice %189 {offsets = [0, 384], sizes = [8, 128], strides = [1, 1]} : vector<8x512xf32> to vector<8x128xf32>
    %cst_59 = arith.constant 5.000000e-01 : f32
    %209 = vector.broadcast %cst_59 : f32 to vector<8x128xf32>
    %210 = arith.mulf %209, %208 : vector<8x128xf32>
    %211 = math.tanh %210 : vector<8x128xf32>
    %cst_60 = arith.constant 1.000000e+00 : f32
    %212 = vector.broadcast %cst_60 : f32 to vector<8x128xf32>
    %213 = arith.addf %211, %212 : vector<8x128xf32>
    %cst_61 = arith.constant 5.000000e-01 : f32
    %214 = vector.broadcast %cst_61 : f32 to vector<8x128xf32>
    %215 = arith.mulf %214, %213 : vector<8x128xf32>
    %216 = arith.mulf %205, %183 : vector<8x128xf32>
    %217 = arith.mulf %197, %207 : vector<8x128xf32>
    %218 = arith.addf %216, %217 : vector<8x128xf32>
    %219 = math.tanh %218 : vector<8x128xf32>
    %220 = arith.mulf %215, %219 : vector<8x128xf32>
    %c24_62 = arith.constant 24 : index
    %c0_63 = arith.constant 0 : index
    %221 = vector.load %arg9[%c24_62, %c0_63] : memref<64x512xf32, #tpu.memory_space<vmem>>, vector<8x512xf32>
    %222 = arith.truncf %220 : vector<8x128xf32> to vector<8x128xbf16>
    %cst_64 = arith.constant dense<0.000000e+00> : vector<8x512xf32>
    %223 = tpu.matmul %222, %13, %cst_64 {dimension_numbers = #tpu.dot_dimension_numbers<[1], [0], [0], [1], [0, 0, 1, 1], [], []>} : vector<8x128xbf16>, vector<128x512xbf16>, vector<8x512xf32> -> vector<8x512xf32>
    %224 = arith.addf %221, %223 : vector<8x512xf32>
    %225 = vector.extract_strided_slice %224 {offsets = [0, 0], sizes = [8, 128], strides = [1, 1]} : vector<8x512xf32> to vector<8x128xf32>
    %cst_65 = arith.constant 5.000000e-01 : f32
    %226 = vector.broadcast %cst_65 : f32 to vector<8x128xf32>
    %227 = arith.mulf %226, %225 : vector<8x128xf32>
    %228 = math.tanh %227 : vector<8x128xf32>
    %cst_66 = arith.constant 1.000000e+00 : f32
    %229 = vector.broadcast %cst_66 : f32 to vector<8x128xf32>
    %230 = arith.addf %228, %229 : vector<8x128xf32>
    %cst_67 = arith.constant 5.000000e-01 : f32
    %231 = vector.broadcast %cst_67 : f32 to vector<8x128xf32>
    %232 = arith.mulf %231, %230 : vector<8x128xf32>
    %233 = vector.extract_strided_slice %224 {offsets = [0, 128], sizes = [8, 128], strides = [1, 1]} : vector<8x512xf32> to vector<8x128xf32>
    %cst_68 = arith.constant 5.000000e-01 : f32
    %234 = vector.broadcast %cst_68 : f32 to vector<8x128xf32>
    %235 = arith.mulf %234, %233 : vector<8x128xf32>
    %236 = math.tanh %235 : vector<8x128xf32>
    %cst_69 = arith.constant 1.000000e+00 : f32
    %237 = vector.broadcast %cst_69 : f32 to vector<8x128xf32>
    %238 = arith.addf %236, %237 : vector<8x128xf32>
    %cst_70 = arith.constant 5.000000e-01 : f32
    %239 = vector.broadcast %cst_70 : f32 to vector<8x128xf32>
    %240 = arith.mulf %239, %238 : vector<8x128xf32>
    %241 = vector.extract_strided_slice %224 {offsets = [0, 256], sizes = [8, 128], strides = [1, 1]} : vector<8x512xf32> to vector<8x128xf32>
    %242 = math.tanh %241 : vector<8x128xf32>
    %243 = vector.extract_strided_slice %224 {offsets = [0, 384], sizes = [8, 128], strides = [1, 1]} : vector<8x512xf32> to vector<8x128xf32>
    %cst_71 = arith.constant 5.000000e-01 : f32
    %244 = vector.broadcast %cst_71 : f32 to vector<8x128xf32>
    %245 = arith.mulf %244, %243 : vector<8x128xf32>
    %246 = math.tanh %245 : vector<8x128xf32>
    %cst_72 = arith.constant 1.000000e+00 : f32
    %247 = vector.broadcast %cst_72 : f32 to vector<8x128xf32>
    %248 = arith.addf %246, %247 : vector<8x128xf32>
    %cst_73 = arith.constant 5.000000e-01 : f32
    %249 = vector.broadcast %cst_73 : f32 to vector<8x128xf32>
    %250 = arith.mulf %249, %248 : vector<8x128xf32>
    %251 = arith.mulf %240, %218 : vector<8x128xf32>
    %252 = arith.mulf %232, %242 : vector<8x128xf32>
    %253 = arith.addf %251, %252 : vector<8x128xf32>
    %254 = math.tanh %253 : vector<8x128xf32>
    %255 = arith.mulf %250, %254 : vector<8x128xf32>
    %c32_74 = arith.constant 32 : index
    %c0_75 = arith.constant 0 : index
    %256 = vector.load %arg9[%c32_74, %c0_75] : memref<64x512xf32, #tpu.memory_space<vmem>>, vector<8x512xf32>
    %257 = arith.truncf %255 : vector<8x128xf32> to vector<8x128xbf16>
    %cst_76 = arith.constant dense<0.000000e+00> : vector<8x512xf32>
    %258 = tpu.matmul %257, %13, %cst_76 {dimension_numbers = #tpu.dot_dimension_numbers<[1], [0], [0], [1], [0, 0, 1, 1], [], []>} : vector<8x128xbf16>, vector<128x512xbf16>, vector<8x512xf32> -> vector<8x512xf32>
    %259 = arith.addf %256, %258 : vector<8x512xf32>
    %260 = vector.extract_strided_slice %259 {offsets = [0, 0], sizes = [8, 128], strides = [1, 1]} : vector<8x512xf32> to vector<8x128xf32>
    %cst_77 = arith.constant 5.000000e-01 : f32
    %261 = vector.broadcast %cst_77 : f32 to vector<8x128xf32>
    %262 = arith.mulf %261, %260 : vector<8x128xf32>
    %263 = math.tanh %262 : vector<8x128xf32>
    %cst_78 = arith.constant 1.000000e+00 : f32
    %264 = vector.broadcast %cst_78 : f32 to vector<8x128xf32>
    %265 = arith.addf %263, %264 : vector<8x128xf32>
    %cst_79 = arith.constant 5.000000e-01 : f32
    %266 = vector.broadcast %cst_79 : f32 to vector<8x128xf32>
    %267 = arith.mulf %266, %265 : vector<8x128xf32>
    %268 = vector.extract_strided_slice %259 {offsets = [0, 128], sizes = [8, 128], strides = [1, 1]} : vector<8x512xf32> to vector<8x128xf32>
    %cst_80 = arith.constant 5.000000e-01 : f32
    %269 = vector.broadcast %cst_80 : f32 to vector<8x128xf32>
    %270 = arith.mulf %269, %268 : vector<8x128xf32>
    %271 = math.tanh %270 : vector<8x128xf32>
    %cst_81 = arith.constant 1.000000e+00 : f32
    %272 = vector.broadcast %cst_81 : f32 to vector<8x128xf32>
    %273 = arith.addf %271, %272 : vector<8x128xf32>
    %cst_82 = arith.constant 5.000000e-01 : f32
    %274 = vector.broadcast %cst_82 : f32 to vector<8x128xf32>
    %275 = arith.mulf %274, %273 : vector<8x128xf32>
    %276 = vector.extract_strided_slice %259 {offsets = [0, 256], sizes = [8, 128], strides = [1, 1]} : vector<8x512xf32> to vector<8x128xf32>
    %277 = math.tanh %276 : vector<8x128xf32>
    %278 = vector.extract_strided_slice %259 {offsets = [0, 384], sizes = [8, 128], strides = [1, 1]} : vector<8x512xf32> to vector<8x128xf32>
    %cst_83 = arith.constant 5.000000e-01 : f32
    %279 = vector.broadcast %cst_83 : f32 to vector<8x128xf32>
    %280 = arith.mulf %279, %278 : vector<8x128xf32>
    %281 = math.tanh %280 : vector<8x128xf32>
    %cst_84 = arith.constant 1.000000e+00 : f32
    %282 = vector.broadcast %cst_84 : f32 to vector<8x128xf32>
    %283 = arith.addf %281, %282 : vector<8x128xf32>
    %cst_85 = arith.constant 5.000000e-01 : f32
    %284 = vector.broadcast %cst_85 : f32 to vector<8x128xf32>
    %285 = arith.mulf %284, %283 : vector<8x128xf32>
    %286 = arith.mulf %275, %253 : vector<8x128xf32>
    %287 = arith.mulf %267, %277 : vector<8x128xf32>
    %288 = arith.addf %286, %287 : vector<8x128xf32>
    %289 = math.tanh %288 : vector<8x128xf32>
    %290 = arith.mulf %285, %289 : vector<8x128xf32>
    %c40_86 = arith.constant 40 : index
    %c0_87 = arith.constant 0 : index
    %291 = vector.load %arg9[%c40_86, %c0_87] : memref<64x512xf32, #tpu.memory_space<vmem>>, vector<8x512xf32>
    %292 = arith.truncf %290 : vector<8x128xf32> to vector<8x128xbf16>
    %cst_88 = arith.constant dense<0.000000e+00> : vector<8x512xf32>
    %293 = tpu.matmul %292, %13, %cst_88 {dimension_numbers = #tpu.dot_dimension_numbers<[1], [0], [0], [1], [0, 0, 1, 1], [], []>} : vector<8x128xbf16>, vector<128x512xbf16>, vector<8x512xf32> -> vector<8x512xf32>
    %294 = arith.addf %291, %293 : vector<8x512xf32>
    %295 = vector.extract_strided_slice %294 {offsets = [0, 0], sizes = [8, 128], strides = [1, 1]} : vector<8x512xf32> to vector<8x128xf32>
    %cst_89 = arith.constant 5.000000e-01 : f32
    %296 = vector.broadcast %cst_89 : f32 to vector<8x128xf32>
    %297 = arith.mulf %296, %295 : vector<8x128xf32>
    %298 = math.tanh %297 : vector<8x128xf32>
    %cst_90 = arith.constant 1.000000e+00 : f32
    %299 = vector.broadcast %cst_90 : f32 to vector<8x128xf32>
    %300 = arith.addf %298, %299 : vector<8x128xf32>
    %cst_91 = arith.constant 5.000000e-01 : f32
    %301 = vector.broadcast %cst_91 : f32 to vector<8x128xf32>
    %302 = arith.mulf %301, %300 : vector<8x128xf32>
    %303 = vector.extract_strided_slice %294 {offsets = [0, 128], sizes = [8, 128], strides = [1, 1]} : vector<8x512xf32> to vector<8x128xf32>
    %cst_92 = arith.constant 5.000000e-01 : f32
    %304 = vector.broadcast %cst_92 : f32 to vector<8x128xf32>
    %305 = arith.mulf %304, %303 : vector<8x128xf32>
    %306 = math.tanh %305 : vector<8x128xf32>
    %cst_93 = arith.constant 1.000000e+00 : f32
    %307 = vector.broadcast %cst_93 : f32 to vector<8x128xf32>
    %308 = arith.addf %306, %307 : vector<8x128xf32>
    %cst_94 = arith.constant 5.000000e-01 : f32
    %309 = vector.broadcast %cst_94 : f32 to vector<8x128xf32>
    %310 = arith.mulf %309, %308 : vector<8x128xf32>
    %311 = vector.extract_strided_slice %294 {offsets = [0, 256], sizes = [8, 128], strides = [1, 1]} : vector<8x512xf32> to vector<8x128xf32>
    %312 = math.tanh %311 : vector<8x128xf32>
    %313 = vector.extract_strided_slice %294 {offsets = [0, 384], sizes = [8, 128], strides = [1, 1]} : vector<8x512xf32> to vector<8x128xf32>
    %cst_95 = arith.constant 5.000000e-01 : f32
    %314 = vector.broadcast %cst_95 : f32 to vector<8x128xf32>
    %315 = arith.mulf %314, %313 : vector<8x128xf32>
    %316 = math.tanh %315 : vector<8x128xf32>
    %cst_96 = arith.constant 1.000000e+00 : f32
    %317 = vector.broadcast %cst_96 : f32 to vector<8x128xf32>
    %318 = arith.addf %316, %317 : vector<8x128xf32>
    %cst_97 = arith.constant 5.000000e-01 : f32
    %319 = vector.broadcast %cst_97 : f32 to vector<8x128xf32>
    %320 = arith.mulf %319, %318 : vector<8x128xf32>
    %321 = arith.mulf %310, %288 : vector<8x128xf32>
    %322 = arith.mulf %302, %312 : vector<8x128xf32>
    %323 = arith.addf %321, %322 : vector<8x128xf32>
    %324 = math.tanh %323 : vector<8x128xf32>
    %325 = arith.mulf %320, %324 : vector<8x128xf32>
    %c48_98 = arith.constant 48 : index
    %c0_99 = arith.constant 0 : index
    %326 = vector.load %arg9[%c48_98, %c0_99] : memref<64x512xf32, #tpu.memory_space<vmem>>, vector<8x512xf32>
    %327 = arith.truncf %325 : vector<8x128xf32> to vector<8x128xbf16>
    %cst_100 = arith.constant dense<0.000000e+00> : vector<8x512xf32>
    %328 = tpu.matmul %327, %13, %cst_100 {dimension_numbers = #tpu.dot_dimension_numbers<[1], [0], [0], [1], [0, 0, 1, 1], [], []>} : vector<8x128xbf16>, vector<128x512xbf16>, vector<8x512xf32> -> vector<8x512xf32>
    %329 = arith.addf %326, %328 : vector<8x512xf32>
    %330 = vector.extract_strided_slice %329 {offsets = [0, 0], sizes = [8, 128], strides = [1, 1]} : vector<8x512xf32> to vector<8x128xf32>
    %cst_101 = arith.constant 5.000000e-01 : f32
    %331 = vector.broadcast %cst_101 : f32 to vector<8x128xf32>
    %332 = arith.mulf %331, %330 : vector<8x128xf32>
    %333 = math.tanh %332 : vector<8x128xf32>
    %cst_102 = arith.constant 1.000000e+00 : f32
    %334 = vector.broadcast %cst_102 : f32 to vector<8x128xf32>
    %335 = arith.addf %333, %334 : vector<8x128xf32>
    %cst_103 = arith.constant 5.000000e-01 : f32
    %336 = vector.broadcast %cst_103 : f32 to vector<8x128xf32>
    %337 = arith.mulf %336, %335 : vector<8x128xf32>
    %338 = vector.extract_strided_slice %329 {offsets = [0, 128], sizes = [8, 128], strides = [1, 1]} : vector<8x512xf32> to vector<8x128xf32>
    %cst_104 = arith.constant 5.000000e-01 : f32
    %339 = vector.broadcast %cst_104 : f32 to vector<8x128xf32>
    %340 = arith.mulf %339, %338 : vector<8x128xf32>
    %341 = math.tanh %340 : vector<8x128xf32>
    %cst_105 = arith.constant 1.000000e+00 : f32
    %342 = vector.broadcast %cst_105 : f32 to vector<8x128xf32>
    %343 = arith.addf %341, %342 : vector<8x128xf32>
    %cst_106 = arith.constant 5.000000e-01 : f32
    %344 = vector.broadcast %cst_106 : f32 to vector<8x128xf32>
    %345 = arith.mulf %344, %343 : vector<8x128xf32>
    %346 = vector.extract_strided_slice %329 {offsets = [0, 256], sizes = [8, 128], strides = [1, 1]} : vector<8x512xf32> to vector<8x128xf32>
    %347 = math.tanh %346 : vector<8x128xf32>
    %348 = vector.extract_strided_slice %329 {offsets = [0, 384], sizes = [8, 128], strides = [1, 1]} : vector<8x512xf32> to vector<8x128xf32>
    %cst_107 = arith.constant 5.000000e-01 : f32
    %349 = vector.broadcast %cst_107 : f32 to vector<8x128xf32>
    %350 = arith.mulf %349, %348 : vector<8x128xf32>
    %351 = math.tanh %350 : vector<8x128xf32>
    %cst_108 = arith.constant 1.000000e+00 : f32
    %352 = vector.broadcast %cst_108 : f32 to vector<8x128xf32>
    %353 = arith.addf %351, %352 : vector<8x128xf32>
    %cst_109 = arith.constant 5.000000e-01 : f32
    %354 = vector.broadcast %cst_109 : f32 to vector<8x128xf32>
    %355 = arith.mulf %354, %353 : vector<8x128xf32>
    %356 = arith.mulf %345, %323 : vector<8x128xf32>
    %357 = arith.mulf %337, %347 : vector<8x128xf32>
    %358 = arith.addf %356, %357 : vector<8x128xf32>
    %359 = math.tanh %358 : vector<8x128xf32>
    %360 = arith.mulf %355, %359 : vector<8x128xf32>
    %c56_110 = arith.constant 56 : index
    %c0_111 = arith.constant 0 : index
    %361 = vector.load %arg9[%c56_110, %c0_111] : memref<64x512xf32, #tpu.memory_space<vmem>>, vector<8x512xf32>
    %362 = arith.truncf %360 : vector<8x128xf32> to vector<8x128xbf16>
    %cst_112 = arith.constant dense<0.000000e+00> : vector<8x512xf32>
    %363 = tpu.matmul %362, %13, %cst_112 {dimension_numbers = #tpu.dot_dimension_numbers<[1], [0], [0], [1], [0, 0, 1, 1], [], []>} : vector<8x128xbf16>, vector<128x512xbf16>, vector<8x512xf32> -> vector<8x512xf32>
    %364 = arith.addf %361, %363 : vector<8x512xf32>
    %365 = vector.extract_strided_slice %364 {offsets = [0, 0], sizes = [8, 128], strides = [1, 1]} : vector<8x512xf32> to vector<8x128xf32>
    %cst_113 = arith.constant 5.000000e-01 : f32
    %366 = vector.broadcast %cst_113 : f32 to vector<8x128xf32>
    %367 = arith.mulf %366, %365 : vector<8x128xf32>
    %368 = math.tanh %367 : vector<8x128xf32>
    %cst_114 = arith.constant 1.000000e+00 : f32
    %369 = vector.broadcast %cst_114 : f32 to vector<8x128xf32>
    %370 = arith.addf %368, %369 : vector<8x128xf32>
    %cst_115 = arith.constant 5.000000e-01 : f32
    %371 = vector.broadcast %cst_115 : f32 to vector<8x128xf32>
    %372 = arith.mulf %371, %370 : vector<8x128xf32>
    %373 = vector.extract_strided_slice %364 {offsets = [0, 128], sizes = [8, 128], strides = [1, 1]} : vector<8x512xf32> to vector<8x128xf32>
    %cst_116 = arith.constant 5.000000e-01 : f32
    %374 = vector.broadcast %cst_116 : f32 to vector<8x128xf32>
    %375 = arith.mulf %374, %373 : vector<8x128xf32>
    %376 = math.tanh %375 : vector<8x128xf32>
    %cst_117 = arith.constant 1.000000e+00 : f32
    %377 = vector.broadcast %cst_117 : f32 to vector<8x128xf32>
    %378 = arith.addf %376, %377 : vector<8x128xf32>
    %cst_118 = arith.constant 5.000000e-01 : f32
    %379 = vector.broadcast %cst_118 : f32 to vector<8x128xf32>
    %380 = arith.mulf %379, %378 : vector<8x128xf32>
    %381 = vector.extract_strided_slice %364 {offsets = [0, 256], sizes = [8, 128], strides = [1, 1]} : vector<8x512xf32> to vector<8x128xf32>
    %382 = math.tanh %381 : vector<8x128xf32>
    %383 = vector.extract_strided_slice %364 {offsets = [0, 384], sizes = [8, 128], strides = [1, 1]} : vector<8x512xf32> to vector<8x128xf32>
    %cst_119 = arith.constant 5.000000e-01 : f32
    %384 = vector.broadcast %cst_119 : f32 to vector<8x128xf32>
    %385 = arith.mulf %384, %383 : vector<8x128xf32>
    %386 = math.tanh %385 : vector<8x128xf32>
    %cst_120 = arith.constant 1.000000e+00 : f32
    %387 = vector.broadcast %cst_120 : f32 to vector<8x128xf32>
    %388 = arith.addf %386, %387 : vector<8x128xf32>
    %cst_121 = arith.constant 5.000000e-01 : f32
    %389 = vector.broadcast %cst_121 : f32 to vector<8x128xf32>
    %390 = arith.mulf %389, %388 : vector<8x128xf32>
    %391 = arith.mulf %380, %358 : vector<8x128xf32>
    %392 = arith.mulf %372, %382 : vector<8x128xf32>
    %393 = arith.addf %391, %392 : vector<8x128xf32>
    %394 = math.tanh %393 : vector<8x128xf32>
    %395 = arith.mulf %390, %394 : vector<8x128xf32>
    %396 = arith.truncf %395 : vector<8x128xf32> to vector<8x128xbf16>
    %c0_122 = arith.constant 0 : index
    %c0_123 = arith.constant 0 : index
    %397 = vector.load %arg5[%c0_122, %c0_123] : memref<256x128xbf16, #tpu.memory_space<vmem>>, vector<128x128xbf16>
    %cst_124 = arith.constant dense<0.000000e+00> : vector<8x128xf32>
    %398 = tpu.matmul %396, %397, %cst_124 {dimension_numbers = #tpu.dot_dimension_numbers<[1], [0], [0], [1], [0, 0, 1, 1], [], []>} : vector<8x128xbf16>, vector<128x128xbf16>, vector<8x128xf32> -> vector<8x128xf32>
    %399 = arith.truncf %113 : vector<8x128xf32> to vector<8x128xbf16>
    %c128_125 = arith.constant 128 : index
    %c0_126 = arith.constant 0 : index
    %400 = vector.load %arg5[%c128_125, %c0_126] : memref<256x128xbf16, #tpu.memory_space<vmem>>, vector<128x128xbf16>
    %cst_127 = arith.constant dense<0.000000e+00> : vector<8x128xf32>
    %401 = tpu.matmul %399, %400, %cst_127 {dimension_numbers = #tpu.dot_dimension_numbers<[1], [0], [0], [1], [0, 0, 1, 1], [], []>} : vector<8x128xbf16>, vector<128x128xbf16>, vector<8x128xf32> -> vector<8x128xf32>
    %402 = arith.addf %398, %401 : vector<8x128xf32>
    %403 = vector.broadcast %6 : vector<1x128xf32> to vector<8x128xf32>
    %404 = arith.addf %402, %403 : vector<8x128xf32>
    %405 = tpu.iota {dimensions = array<i32: 1>} : vector<1x128xi32>
    %c32_i32 = arith.constant 32 : i32
    %406 = vector.broadcast %c32_i32 : i32 to vector<1x128xi32>
    %407 = arith.cmpi slt, %405, %406 : vector<1x128xi32>
    %408 = arith.extui %407 : vector<1x128xi1> to vector<1x128xi32>
    %409 = arith.sitofp %408 : vector<1x128xi32> to vector<1x128xf32>
    %cst_128 = arith.constant dense<0.000000e+00> : vector<8xf32>
    %410 = vector.multi_reduction <add>, %404, %cst_128 [1] : vector<8x128xf32> to vector<8xf32>
    %411 = vector.shape_cast %410 : vector<8xf32> to vector<8x1xf32>
    %cst_129 = arith.constant 3.125000e-02 : f32
    %412 = vector.broadcast %cst_129 : f32 to vector<8x1xf32>
    %413 = arith.mulf %411, %412 : vector<8x1xf32>
    %414 = vector.broadcast %413 : vector<8x1xf32> to vector<8x128xf32>
    %415 = arith.subf %404, %414 : vector<8x128xf32>
    %416 = vector.broadcast %409 : vector<1x128xf32> to vector<8x128xf32>
    %417 = arith.mulf %415, %416 : vector<8x128xf32>
    %418 = arith.mulf %417, %417 : vector<8x128xf32>
    %cst_130 = arith.constant dense<0.000000e+00> : vector<8xf32>
    %419 = vector.multi_reduction <add>, %418, %cst_130 [1] : vector<8x128xf32> to vector<8xf32>
    %420 = vector.shape_cast %419 : vector<8xf32> to vector<8x1xf32>
    %cst_131 = arith.constant 0.0322580636 : f32
    %421 = vector.broadcast %cst_131 : f32 to vector<8x1xf32>
    %422 = arith.mulf %420, %421 : vector<8x1xf32>
    %423 = math.sqrt %422 : vector<8x1xf32>
    %cst_132 = arith.constant 9.99999997E-7 : f32
    %424 = vector.broadcast %cst_132 : f32 to vector<8x1xf32>
    %425 = arith.addf %423, %424 : vector<8x1xf32>
    %cst_133 = arith.constant 1.000000e+00 : f32
    %426 = vector.broadcast %cst_133 : f32 to vector<8x1xf32>
    %427 = arith.divf %426, %425 : vector<8x1xf32>
    %428 = vector.broadcast %413 : vector<8x1xf32> to vector<8x128xf32>
    %429 = arith.subf %404, %428 : vector<8x128xf32>
    %430 = vector.broadcast %427 : vector<8x1xf32> to vector<8x128xf32>
    %431 = arith.mulf %429, %430 : vector<8x128xf32>
    %432 = vector.broadcast %7 : vector<1x128xf32> to vector<8x128xf32>
    %433 = arith.mulf %431, %432 : vector<8x128xf32>
    %434 = vector.broadcast %8 : vector<1x128xf32> to vector<8x128xf32>
    %435 = arith.addf %433, %434 : vector<8x128xf32>
    %436 = arith.addf %404, %435 : vector<8x128xf32>
    %cst_134 = arith.constant 0.000000e+00 : f32
    %437 = vector.broadcast %cst_134 : f32 to vector<8x128xf32>
    %438 = arith.maximumf %436, %437 : vector<8x128xf32>
    %439 = arith.truncf %438 : vector<8x128xf32> to vector<8x128xbf16>
    %c0_135 = arith.constant 0 : index
    %c0_136 = arith.constant 0 : index
    %440 = vector.load %arg6[%c0_135, %c0_136] : memref<128x128xbf16, #tpu.memory_space<vmem>>, vector<128x128xbf16>
    %cst_137 = arith.constant dense<0.000000e+00> : vector<8x128xf32>
    %441 = tpu.matmul %439, %440, %cst_137 {dimension_numbers = #tpu.dot_dimension_numbers<[1], [0], [0], [1], [0, 0, 1, 1], [], []>} : vector<8x128xbf16>, vector<128x128xbf16>, vector<8x128xf32> -> vector<8x128xf32>
    %442 = vector.broadcast %9 : vector<1x128xf32> to vector<8x128xf32>
    %443 = arith.addf %441, %442 : vector<8x128xf32>
    %444 = tpu.iota {dimensions = array<i32: 1>} : vector<1x128xi32>
    %c32_i32_138 = arith.constant 32 : i32
    %445 = vector.broadcast %c32_i32_138 : i32 to vector<1x128xi32>
    %446 = arith.cmpi slt, %444, %445 : vector<1x128xi32>
    %447 = arith.extui %446 : vector<1x128xi1> to vector<1x128xi32>
    %448 = arith.sitofp %447 : vector<1x128xi32> to vector<1x128xf32>
    %cst_139 = arith.constant dense<0.000000e+00> : vector<8xf32>
    %449 = vector.multi_reduction <add>, %443, %cst_139 [1] : vector<8x128xf32> to vector<8xf32>
    %450 = vector.shape_cast %449 : vector<8xf32> to vector<8x1xf32>
    %cst_140 = arith.constant 3.125000e-02 : f32
    %451 = vector.broadcast %cst_140 : f32 to vector<8x1xf32>
    %452 = arith.mulf %450, %451 : vector<8x1xf32>
    %453 = vector.broadcast %452 : vector<8x1xf32> to vector<8x128xf32>
    %454 = arith.subf %443, %453 : vector<8x128xf32>
    %455 = vector.broadcast %448 : vector<1x128xf32> to vector<8x128xf32>
    %456 = arith.mulf %454, %455 : vector<8x128xf32>
    %457 = arith.mulf %456, %456 : vector<8x128xf32>
    %cst_141 = arith.constant dense<0.000000e+00> : vector<8xf32>
    %458 = vector.multi_reduction <add>, %457, %cst_141 [1] : vector<8x128xf32> to vector<8xf32>
    %459 = vector.shape_cast %458 : vector<8xf32> to vector<8x1xf32>
    %cst_142 = arith.constant 0.0322580636 : f32
    %460 = vector.broadcast %cst_142 : f32 to vector<8x1xf32>
    %461 = arith.mulf %459, %460 : vector<8x1xf32>
    %462 = math.sqrt %461 : vector<8x1xf32>
    %cst_143 = arith.constant 9.99999997E-7 : f32
    %463 = vector.broadcast %cst_143 : f32 to vector<8x1xf32>
    %464 = arith.addf %462, %463 : vector<8x1xf32>
    %cst_144 = arith.constant 1.000000e+00 : f32
    %465 = vector.broadcast %cst_144 : f32 to vector<8x1xf32>
    %466 = arith.divf %465, %464 : vector<8x1xf32>
    %467 = vector.broadcast %452 : vector<8x1xf32> to vector<8x128xf32>
    %468 = arith.subf %443, %467 : vector<8x128xf32>
    %469 = vector.broadcast %466 : vector<8x1xf32> to vector<8x128xf32>
    %470 = arith.mulf %468, %469 : vector<8x128xf32>
    %471 = vector.broadcast %10 : vector<1x128xf32> to vector<8x128xf32>
    %472 = arith.mulf %470, %471 : vector<8x128xf32>
    %473 = vector.broadcast %11 : vector<1x128xf32> to vector<8x128xf32>
    %474 = arith.addf %472, %473 : vector<8x128xf32>
    %475 = arith.addf %443, %474 : vector<8x128xf32>
    %cst_145 = arith.constant 0.000000e+00 : f32
    %476 = vector.broadcast %cst_145 : f32 to vector<8x128xf32>
    %477 = arith.maximumf %475, %476 : vector<8x128xf32>
    %478 = arith.truncf %477 : vector<8x128xf32> to vector<8x128xbf16>
    %c0_146 = arith.constant 0 : index
    %c0_147 = arith.constant 0 : index
    %479 = vector.load %arg7[%c0_146, %c0_147] : memref<128x128xbf16, #tpu.memory_space<vmem>>, vector<128x128xbf16>
    %cst_148 = arith.constant dense<0.000000e+00> : vector<8x128xf32>
    %480 = tpu.matmul %478, %479, %cst_148 {dimension_numbers = #tpu.dot_dimension_numbers<[1], [0], [0], [1], [0, 0, 1, 1], [], []>} : vector<8x128xbf16>, vector<128x128xbf16>, vector<8x128xf32> -> vector<8x128xf32>
    %481 = vector.broadcast %12 : vector<1x128xf32> to vector<8x128xf32>
    %482 = arith.addf %480, %481 : vector<8x128xf32>
    %c0_149 = arith.constant 0 : index
    %c0_150 = arith.constant 0 : index
    %483 = vector.load %arg8[%c0_149, %c0_150] : memref<8x128xf32, #tpu.memory_space<vmem>>, vector<8x128xf32>
    tpu.vector_store %arg8[%c0_149, %c0_150], %482 {strides = array<i32>} : memref<8x128xf32, #tpu.memory_space<vmem>>, vector<8x128xf32>,
    return
  }
  func.func @transform_0(%arg0: i32) -> (i32, i32) {
    %c0_i32 = arith.constant 0 : i32
    %c0_i32_0 = arith.constant 0 : i32
    return %arg0, %c0_i32 : i32, i32
  }
  func.func @transform_1(%arg0: i32) -> (i32, i32) {
    %c0_i32 = arith.constant 0 : i32
    %c0_i32_0 = arith.constant 0 : i32
    return %arg0, %c0_i32 : i32, i32
  }
  func.func @transform_2(%arg0: i32) -> (i32, i32) {
    %c0_i32 = arith.constant 0 : i32
    %c0_i32_0 = arith.constant 0 : i32
    %c0_i32_1 = arith.constant 0 : i32
    return %c0_i32, %c0_i32_0 : i32, i32
  }
  func.func @transform_3(%arg0: i32) -> (i32, i32) {
    %c0_i32 = arith.constant 0 : i32
    %c0_i32_0 = arith.constant 0 : i32
    %c0_i32_1 = arith.constant 0 : i32
    return %c0_i32, %c0_i32_0 : i32, i32
  }
  func.func @transform_4(%arg0: i32) -> (i32, i32) {
    %c0_i32 = arith.constant 0 : i32
    %c0_i32_0 = arith.constant 0 : i32
    %c0_i32_1 = arith.constant 0 : i32
    return %c0_i32, %c0_i32_0 : i32, i32
  }
  func.func @transform_5(%arg0: i32) -> (i32, i32) {
    %c0_i32 = arith.constant 0 : i32
    %c0_i32_0 = arith.constant 0 : i32
    %c0_i32_1 = arith.constant 0 : i32
    return %c0_i32, %c0_i32_0 : i32, i32
  }
  func.func @transform_6(%arg0: i32) -> (i32, i32) {
    %c0_i32 = arith.constant 0 : i32
    %c0_i32_0 = arith.constant 0 : i32
    %c0_i32_1 = arith.constant 0 : i32
    return %c0_i32, %c0_i32_0 : i32, i32
  }
  func.func @transform_7(%arg0: i32) -> (i32, i32) {
    %c0_i32 = arith.constant 0 : i32
    %c0_i32_0 = arith.constant 0 : i32
    return %arg0, %c0_i32 : i32, i32
  }
}

</mosaic_0001>

<bundles_post_ra>
// kernel: tpu_custom_call.1
= control target key start
LH: loop header
LB: loop body
LE: loop exit
PB: predicated region body
PF: predicated region fallthrough
CT: control target
= control target key end

     0   :  { %12 = vsyncpa [#allocation4], 0  ;;  %s3217_s0 = inlined_call_operand.hbm [shape: f32[8,8], index: 0, kind: input, shape index: {}]   ;;  %s3218_s1 = inlined_call_operand.hbm [shape: f32[8,512], index: 1, kind: input, shape index: {}]   ;;  %s3219_s2 = inlined_call_operand.hbm [shape: bf16[256,512], index: 2, kind: input, shape index: {}]   ;;  %s3220_s3 = inlined_call_operand.hbm [shape: f32[8,512], index: 3, kind: input, shape index: {}]   ;;  %s3221_s4 = inlined_call_operand.hbm [shape: bf16[256,128], index: 4, kind: input, shape index: {}]   ;;  %s3222_s5 = inlined_call_operand.hbm [shape: bf16[128,128], index: 5, kind: input, shape index: {}]   ;;  %s3223_s6 = inlined_call_operand.hbm [shape: bf16[128,128], index: 6, kind: input, shape index: {}]   ;;  %s3224_s7 = inlined_call_operand.hbm [shape: f32[8,128], index: 7, kind: output, shape index: {}]  }
   0x1   :  { %13 = vsyncpa [#allocation7], 0 }
   0x2   :  { %14 = vsyncpa [#allocation10], 0 }
   0x3   :  { %15 = vsyncpa [#allocation13], 0  ;;  %s33_s26 = sshll.u32 %s3218_s1, 4  ;;  %s34_s26 = int_to_ptr.hbm [resolvable:$true] %s33_s26 }
   0x4   :  { %16 = vsyncpa [#allocation5], 0  ;;  %s2628_s27 = smov [#allocation6]   ;;  %s57_s8 = sshll.u32 %s3220_s3, 4  ;;  %s58_s8 = int_to_ptr.hbm [resolvable:$true] %s57_s8 }
   0x5   :  { %s35_s28 = sshll.u32 %s2628_s27, 4  ;;  %s2629_s9 = smov [#allocation9]   ;;  %s36_s28 = int_to_ptr.vmem [resolvable:$true] %s35_s28 }
   0x6   :  { %38 = dma.hbm_to_vmem [thread:$0]  %s34_s26, 512, %s36_s28, [#allocation7]  }
   0x7   :  { %s59_s10 = sshll.u32 %s2629_s9, 4  ;;  %s80_s13 = sshll.u32 %s3222_s5, 4  ;;  %s60_s10 = int_to_ptr.vmem [resolvable:$true] %s59_s10  ;;  %s81_s13 = int_to_ptr.hbm [resolvable:$true] %s80_s13 }
   0x8   :  { %62 = dma.hbm_to_vmem [thread:$0]  %s58_s8, 512, %s60_s10, [#allocation10]  }
   0x9   :  { %s2630_s1 = smov [#allocation12]   ;;  %s22_s17 = sshll.u32 %s3217_s0, 4  ;;  %s23_s17 = int_to_ptr.hbm [resolvable:$true] %s22_s17 }
   0xa   :  { %s82_s14 = sshll.u32 %s2630_s1, 4  ;;  %s2631_s18 = smov 64   ;;  %s83_s14 = int_to_ptr.vmem [resolvable:$true] %s82_s14 }
   0xb   :  { %s2632_s3 = smov 4   ;;  %s2633_s19 = smov [#allocation3]  }
   0xc   :  { %88 = dma.hbm_to_vmem [thread:$0]  %s81_s13, 1024, %s83_s14, [#allocation13], %s2631_s18, %s2631_s18, %s2632_s3  }
   0xd   :  { %s24_s20 = sshll.u32 %s2633_s19, 4  ;;  %s43_s5 = sshll.u32 %s3219_s2, 4  ;;  %s25_s20 = int_to_ptr.vmem [resolvable:$true] %s24_s20  ;;  %s44_s5 = int_to_ptr.hbm [resolvable:$true] %s43_s5 }
   0xe   :  { %27 = dma.hbm_to_vmem [thread:$0]  %s23_s17, 128, %s25_s20, [#allocation4]  }
   0xf   :  { %s2634_s23 = smov [#allocation8]   ;;  %s67_s26 = sshll.u32 %s3221_s4, 4  ;;  %s68_s26 = int_to_ptr.hbm [resolvable:$true] %s67_s26 }
  0x10   :  { %s45_s24 = sshll.u32 %s2634_s23, 4  ;;  %s2635_s27 = smov 256   ;;  %s46_s24 = int_to_ptr.vmem [resolvable:$true] %s45_s24 }
  0x11   :  { %s2636_s28 = smov 16   ;;  %s2637_s29 = smov [#allocation11]  }
  0x12   :  { %51 = dma.hbm_to_vmem [thread:$0]  %s44_s5, 8192, %s46_s24, [#allocation7], %s2635_s27, %s2635_s27, %s2636_s28  }
  0x13   :  { %s69_s30 = sshll.u32 %s2637_s29, 4  ;;  %s93_s2 = sshll.u32 %s3223_s6, 4  ;;  %s70_s30 = int_to_ptr.vmem [resolvable:$true] %s69_s30  ;;  %s94_s2 = int_to_ptr.hbm [resolvable:$true] %s93_s2 }
  0x14   :  { %75 = dma.hbm_to_vmem [thread:$0]  %s68_s26, 2048, %s70_s30, [#allocation10], %s2631_s18, %s2631_s18, %s2632_s3  }
  0x15   :  { %s2638_s10 = smov [#allocation14]  }
  0x16   :  { %s95_s11 = sshll.u32 %s2638_s10, 4  ;;  %s96_s11 = int_to_ptr.vmem [resolvable:$true] %s95_s11 }
  0x17   :  { %101 = dma.hbm_to_vmem [thread:$0]  %s94_s2, 1024, %s96_s11, [#allocation13], %s2631_s18, %s2631_s18, %s2632_s3  }
  0x18   :  { %2618 = dma.done.wait [#allocation4], 128  }
  0x19   :  { %2619 = vsyncadd [#allocation4], 4294967168 }
  0x1a   :  { %2620 = dma.done.wait [#allocation7], 8704  }
  0x1b   :  { %2621 = vsyncadd [#allocation7], 4294958592 }
  0x1c   :  { %2622 = dma.done.wait [#allocation10], 2560  }
  0x1d   :  { %2623 = vsyncadd [#allocation10], 4294964736 }
  0x1e   :  { %2624 = dma.done.wait [#allocation13], 2048  }
  0x1f   :  { %2625 = vsyncadd [#allocation13], 4294965248  ;;  %v1927_v0 = vld [vmem:[#allocation8 + $0x1e0] sm:$0xf]  ;;  %v2260_v1 = vld [vmem:[#allocation8 + $0x1ec] sm:$0xf0] }
  0x20   :  { %v2258_v2 = vld [vmem:[#allocation8 + $0x1e4] sm:$0xf]  ;;  %v1928_v3 = vor.u32 %v2260_v1, %v1927_v0  ;;  %v1929_v4 = vld [vmem:[#allocation8 + $0x1f0] sm:$0xf0]  ;;  %v1935_v5 = vld [vmem:[#allocation8 + $0x1e8] sm:$0xf] }
  0x21   :  { %v2261_v6 = vld [vmem:[#allocation8 + $0x1f4] sm:$0xf0]  ;;  %v1932_v7 = vor.u32 %v2258_v2, %v1929_v4  ;;  %v2259_v9 = vld [vmem:[#allocation8 + $0x1ec] sm:$0xf]  ;;  %v1937_v10 = vld [vmem:[#allocation8 + $0x1f8] sm:$0xf0] }
  0x22   :  { %v1936_v8 = vor.u32 %v2261_v6, %v1935_v5  ;;  %v1911_v11 = vld [vmem:[#allocation8 + $0x1c0] sm:$0xf]  ;;  %517 = vmatpush.bf16.msra.mxu0 %v1928_v3  ;;  %v1940_v12 = vor.u32 %v2259_v9, %v1937_v10  ;;  %v2256_v13 = vld [vmem:[#allocation8 + $0x1cc] sm:$0xf0]  ;;  %v2254_v14 = vld [vmem:[#allocation8 + $0x1c4] sm:$0xf] }
  0x23   :  { %v1913_v15 = vld [vmem:[#allocation8 + $0x1d0] sm:$0xf0]  ;;  %530 = vmatpush.bf16.msra.mxu1 %v1932_v7  ;;  %v1912_v16 = vor.u32 %v2256_v13, %v1911_v11  ;;  %v1919_v18 = vld [vmem:[#allocation8 + $0x1c8] sm:$0xf]  ;;  %v2257_v19 = vld [vmem:[#allocation8 + $0x1d4] sm:$0xf0] }
  0x24   :  { %543 = vmatpush.bf16.msra.mxu2 %v1936_v8  ;;  %v1916_v17 = vor.u32 %v2254_v14, %v1913_v15  ;;  %v2255_v20 = vld [vmem:[#allocation8 + $0x1cc] sm:$0xf]  ;;  %556 = vmatpush.bf16.msra.mxu3 %v1940_v12  ;;  %v1920_v21 = vor.u32 %v2257_v19, %v1919_v18  ;;  %v1921_v22 = vld [vmem:[#allocation8 + $0x1d8] sm:$0xf0]  ;;  %v1895_v23 = vld [vmem:[#allocation8 + $0x1a0] sm:$0xf] }
  0x25   :  { %v2252_v24 = vld [vmem:[#allocation8 + $0x1ac] sm:$0xf0]  ;;  %v1924_v25 = vor.u32 %v2255_v20, %v1921_v22  ;;  %v2250_v26 = vld [vmem:[#allocation8 + $0x1a4] sm:$0xf]  ;;  %v1897_v27 = vld [vmem:[#allocation8 + $0x1b0] sm:$0xf0] }
  0x26   :  { %v1903_v28 = vld [vmem:[#allocation8 + $0x1a8] sm:$0xf]  ;;  %518 = vmatpush.bf16.msra.mxu0 %v1912_v16  ;;  %v1896_v29 = vor.u32 %v2252_v24, %v1895_v23  ;;  %v2253_v30 = vld [vmem:[#allocation8 + $0x1b4] sm:$0xf0]  ;;  %v2251_v31 = vld [vmem:[#allocation8 + $0x1ac] sm:$0xf]  ;;  %v1900_v33 = vor.u32 %v2250_v26, %v1897_v27 }
  0x27   :  { %v1905_v32 = vld [vmem:[#allocation8 + $0x1b8] sm:$0xf0]  ;;  %531 = vmatpush.bf16.msra.mxu1 %v1916_v17  ;;  %v1904_v34 = vor.u32 %v2253_v30, %v1903_v28  ;;  %v1879_v35 = vld [vmem:[#allocation8 + $0x180] sm:$0xf]  ;;  %v2248_v36 = vld [vmem:[#allocation8 + $0x18c] sm:$0xf0] }
  0x28   :  { %544 = vmatpush.bf16.msra.mxu2 %v1920_v21  ;;  %v2246_v37 = vld [vmem:[#allocation8 + $0x184] sm:$0xf]  ;;  %557 = vmatpush.bf16.msra.mxu3 %v1924_v25  ;;  %v1908_v38 = vor.u32 %v2251_v31, %v1905_v32  ;;  %v1881_v39 = vld [vmem:[#allocation8 + $0x190] sm:$0xf0]  ;;  %v1887_v40 = vld [vmem:[#allocation8 + $0x188] sm:$0xf]  ;;  %v1880_v44 = vor.u32 %v2248_v36, %v1879_v35 }
  0x29   :  { %v2249_v41 = vld [vmem:[#allocation8 + $0x194] sm:$0xf0]  ;;  %v2247_v42 = vld [vmem:[#allocation8 + $0x18c] sm:$0xf]  ;;  %v1889_v43 = vld [vmem:[#allocation8 + $0x198] sm:$0xf0]  ;;  %v1884_v45 = vor.u32 %v2246_v37, %v1881_v39 }
  0x2a   :  { %519 = vmatpush.bf16.msra.mxu0 %v1896_v29  ;;  %v1888_v46 = vor.u32 %v2249_v41, %v1887_v40  ;;  %v1863_v47 = vld [vmem:[#allocation8 + $0x160] sm:$0xf]  ;;  %v2244_v48 = vld [vmem:[#allocation8 + $0x16c] sm:$0xf0]  ;;  %v2242_v49 = vld [vmem:[#allocation8 + $0x164] sm:$0xf]  ;;  %v1892_v50 = vor.u32 %v2247_v42, %v1889_v43 }
  0x2b   :  { %532 = vmatpush.bf16.msra.mxu1 %v1900_v33  ;;  %v1865_v51 = vld [vmem:[#allocation8 + $0x170] sm:$0xf0]  ;;  %v1871_v52 = vld [vmem:[#allocation8 + $0x168] sm:$0xf]  ;;  %v2245_v53 = vld [vmem:[#allocation8 + $0x174] sm:$0xf0]  ;;  %v1864_v56 = vor.u32 %v2244_v48, %v1863_v47 }
  0x2c   :  { %545 = vmatpush.bf16.msra.mxu2 %v1904_v34  ;;  %558 = vmatpush.bf16.msra.mxu3 %v1908_v38  ;;  %v2243_v54 = vld [vmem:[#allocation8 + $0x16c] sm:$0xf]  ;;  %v1873_v55 = vld [vmem:[#allocation8 + $0x178] sm:$0xf0]  ;;  %v1868_v57 = vor.u32 %v2242_v49, %v1865_v51  ;;  %v1872_v58 = vor.u32 %v2245_v53, %v1871_v52  ;;  %v1847_v59 = vld [vmem:[#allocation8 + $0x140] sm:$0xf] }
  0x2d   :  { %v2240_v60 = vld [vmem:[#allocation8 + $0x14c] sm:$0xf0]  ;;  %v2238_v61 = vld [vmem:[#allocation8 + $0x144] sm:$0xf]  ;;  %v1876_v62 = vor.u32 %v2243_v54, %v1873_v55  ;;  %v1849_v63 = vld [vmem:[#allocation8 + $0x150] sm:$0xf0] }
  0x2e   :  { %520 = vmatpush.bf16.msra.mxu0 %v1880_v44  ;;  %v1855_v0 = vld [vmem:[#allocation8 + $0x148] sm:$0xf]  ;;  %v2241_v1 = vld [vmem:[#allocation8 + $0x154] sm:$0xf0]  ;;  %v2239_v2 = vld [vmem:[#allocation8 + $0x14c] sm:$0xf]  ;;  %v1848_v4 = vor.u32 %v2240_v60, %v1847_v59  ;;  %v1852_v5 = vor.u32 %v2238_v61, %v1849_v63 }
  0x2f   :  { %533 = vmatpush.bf16.msra.mxu1 %v1884_v45  ;;  %v1857_v3 = vld [vmem:[#allocation8 + $0x158] sm:$0xf0]  ;;  %v1856_v6 = vor.u32 %v2241_v1, %v1855_v0  ;;  %v1831_v7 = vld [vmem:[#allocation8 + $0x120] sm:$0xf]  ;;  %v2236_v8 = vld [vmem:[#allocation8 + $0x12c] sm:$0xf0] }
  0x30   :  { %546 = vmatpush.bf16.msra.mxu2 %v1888_v46  ;;  %559 = vmatpush.bf16.msra.mxu3 %v1892_v50  ;;  %v2234_v9 = vld [vmem:[#allocation8 + $0x124] sm:$0xf]  ;;  %v1860_v10 = vor.u32 %v2239_v2, %v1857_v3  ;;  %v1833_v11 = vld [vmem:[#allocation8 + $0x130] sm:$0xf0]  ;;  %v1839_v12 = vld [vmem:[#allocation8 + $0x128] sm:$0xf]  ;;  %v1832_v16 = vor.u32 %v2236_v8, %v1831_v7 }
  0x31   :  { %v2237_v13 = vld [vmem:[#allocation8 + $0x134] sm:$0xf0]  ;;  %v2235_v14 = vld [vmem:[#allocation8 + $0x12c] sm:$0xf]  ;;  %v1841_v15 = vld [vmem:[#allocation8 + $0x138] sm:$0xf0]  ;;  %v1836_v19 = vor.u32 %v2234_v9, %v1833_v11 }
  0x32   :  { %521 = vmatpush.bf16.msra.mxu0 %v1864_v56  ;;  %v1815_v17 = vld [vmem:[#allocation8 + $0x100] sm:$0xf]  ;;  %v2232_v18 = vld [vmem:[#allocation8 + $0x10c] sm:$0xf0]  ;;  %v1840_v20 = vor.u32 %v2237_v13, %v1839_v12  ;;  %v2230_v21 = vld [vmem:[#allocation8 + $0x104] sm:$0xf]  ;;  %v1844_v24 = vor.u32 %v2235_v14, %v1841_v15 }
  0x33   :  { %534 = vmatpush.bf16.msra.mxu1 %v1868_v57  ;;  %v1817_v22 = vld [vmem:[#allocation8 + $0x110] sm:$0xf0]  ;;  %v1823_v23 = vld [vmem:[#allocation8 + $0x108] sm:$0xf]  ;;  %v2233_v25 = vld [vmem:[#allocation8 + $0x114] sm:$0xf0]  ;;  %v1816_v31 = vor.u32 %v2232_v18, %v1815_v17 }
  0x34   :  { %547 = vmatpush.bf16.msra.mxu2 %v1872_v58  ;;  %560 = vmatpush.bf16.msra.mxu3 %v1876_v62  ;;  %v2231_v26 = vld [vmem:[#allocation8 + $0x10c] sm:$0xf]  ;;  %v1825_v27 = vld [vmem:[#allocation8 + $0x118] sm:$0xf0]  ;;  %v2055_v28 = vld [vmem:[#allocation8 + $0xe0] sm:$0xf]  ;;  %v1820_v35 = vor.u32 %v2230_v21, %v1817_v22  ;;  %v1824_v36 = vor.u32 %v2233_v25, %v1823_v23 }
  0x35   :  { %v2228_v29 = vld [vmem:[#allocation8 + $0xec] sm:$0xf0]  ;;  %v2226_v30 = vld [vmem:[#allocation8 + $0xe4] sm:$0xf]  ;;  %v2057_v32 = vld [vmem:[#allocation8 + $0xf0] sm:$0xf0]  ;;  %v1828_v40 = vor.u32 %v2231_v26, %v1825_v27 }
  0x36   :  { %522 = vmatpush.bf16.msra.mxu0 %v1848_v4  ;;  %v2063_v33 = vld [vmem:[#allocation8 + $0xe8] sm:$0xf]  ;;  %v2229_v34 = vld [vmem:[#allocation8 + $0xf4] sm:$0xf0]  ;;  %v2227_v37 = vld [vmem:[#allocation8 + $0xec] sm:$0xf]  ;;  %v2719_v41 = vor.u32 %v2228_v29, %v2055_v28  ;;  %v2721_v42 = vor.u32 %v2226_v30, %v2057_v32 }
  0x37   :  { %535 = vmatpush.bf16.msra.mxu1 %v1852_v5  ;;  %v2065_v38 = vld [vmem:[#allocation8 + $0xf8] sm:$0xf0]  ;;  %v201_v39 = vld [vmem:[#allocation6 + $0x10] sm:$0xff]  ;;  %v2723_v43 = vor.u32 %v2229_v34, %v2063_v33  ;;  %v2039_v44 = vld [vmem:[#allocation8 + $0xc0] sm:$0xf]  ;;  %v2639_v17 = vmov 4  }
  0x38   :  { %548 = vmatpush.bf16.msra.mxu2 %v1856_v6  ;;  %561 = vmatpush.bf16.msra.mxu3 %v1860_v10  ;;  %v2224_v45 = vld [vmem:[#allocation8 + $0xcc] sm:$0xf0]  ;;  %v2222_v46 = vld [vmem:[#allocation8 + $0xc4] sm:$0xf]  ;;  %v2725_v47 = vor.u32 %v2227_v37, %v2065_v38  ;;  %v2041_v48 = vld [vmem:[#allocation8 + $0xd0] sm:$0xf0]  ;;  %v356_v51 = vpack.c.bf16 %v201_v39, %v201_v39 }
  0x39   :  { %v2047_v49 = vld [vmem:[#allocation8 + $0xc8] sm:$0xf]  ;;  %v2225_v50 = vld [vmem:[#allocation8 + $0xd4] sm:$0xf0]  ;;  %v2223_v52 = vld [vmem:[#allocation8 + $0xcc] sm:$0xf]  ;;  %v2728_v54 = vor.u32 %v2224_v45, %v2039_v44  ;;  %v2732_v55 = vor.u32 %v2222_v46, %v2041_v48  ;;  %2319 = vset.pattern.permute.xlu2 %v2639_v17 }
  0x3a   :  { %523 = vmatpush.bf16.msra.mxu0 %v1832_v16  ;;  %v2049_v53 = vld [vmem:[#allocation8 + $0xd8] sm:$0xf0]  ;;  %v2734_v56 = vor.u32 %v2225_v50, %v2047_v49  ;;  %v2023_v57 = vld [vmem:[#allocation8 + $0xa0] sm:$0xf]  ;;  %v2220_v58 = vld [vmem:[#allocation8 + $0xac] sm:$0xf0] }
  0x3b   :  { %536 = vmatpush.bf16.msra.mxu1 %v1836_v19  ;;  %v2218_v59 = vld [vmem:[#allocation8 + $0xa4] sm:$0xf]  ;;  %v2737_v60 = vor.u32 %v2223_v52, %v2049_v53  ;;  %v2025_v61 = vld [vmem:[#allocation8 + $0xb0] sm:$0xf0]  ;;  %v2031_v62 = vld [vmem:[#allocation8 + $0xa8] sm:$0xf]  ;;  %v2740_v2 = vor.u32 %v2220_v58, %v2023_v57 }
  0x3c   :  { %549 = vmatpush.bf16.msra.mxu2 %v1840_v20  ;;  %562 = vmatpush.bf16.msra.mxu3 %v1844_v24  ;;  %v2221_v63 = vld [vmem:[#allocation8 + $0xb4] sm:$0xf0]  ;;  %v2219_v0 = vld [vmem:[#allocation8 + $0xac] sm:$0xf]  ;;  %v2033_v1 = vld [vmem:[#allocation8 + $0xb8] sm:$0xf0]  ;;  %v2744_v3 = vor.u32 %v2218_v59, %v2025_v61 }
  0x3d   :  { %v2746_v4 = vor.u32 %v2221_v63, %v2031_v62  ;;  %v2007_v5 = vld [vmem:[#allocation8 + $0x80] sm:$0xf]  ;;  %v2216_v6 = vld [vmem:[#allocation8 + $0x8c] sm:$0xf0]  ;;  %v2214_v7 = vld [vmem:[#allocation8 + $0x84] sm:$0xf]  ;;  %v2749_v8 = vor.u32 %v2219_v0, %v2033_v1 }
  0x3e   :  { %524 = vmatpush.bf16.msra.mxu0 %v1816_v31  ;;  %v2009_v9 = vld [vmem:[#allocation8 + $0x90] sm:$0xf0]  ;;  %v2015_v10 = vld [vmem:[#allocation8 + $0x88] sm:$0xf]  ;;  %v2217_v11 = vld [vmem:[#allocation8 + $0x94] sm:$0xf0]  ;;  %v2754_v15 = vor.u32 %v2216_v6, %v2007_v5 }
  0x3f   :  { %537 = vmatpush.bf16.msra.mxu1 %v1820_v35  ;;  %v2215_v12 = vld [vmem:[#allocation8 + $0x8c] sm:$0xf]  ;;  %v2017_v13 = vld [vmem:[#allocation8 + $0x98] sm:$0xf0]  ;;  %v1991_v16 = vld [vmem:[#allocation8 + $0x60] sm:$0xf]  ;;  %v2758_v18 = vor.u32 %v2214_v7, %v2009_v9  ;;  %v2760_v19 = vor.u32 %v2217_v11, %v2015_v10 }
  0x40   :  { %550 = vmatpush.bf16.msra.mxu2 %v1824_v36  ;;  %563 = vmatpush.bf16.msra.mxu3 %v1828_v40  ;;  %v2751_v14 = vld [vmem:[#allocation3] sm:$0xff]  ;;  %v2212_v20 = vld [vmem:[#allocation8 + $0x6c] sm:$0xf0]  ;;  %v2210_v21 = vld [vmem:[#allocation8 + $0x64] sm:$0xf]  ;;  %v2763_v23 = vor.u32 %v2215_v12, %v2017_v13  ;;  %v2640_v28 = vmov 0  }
  0x41   :  { %525 = vmatmul.bf16.vlgmr.msra.gmra.mxu0 %v356_v51  ;;  %v1993_v22 = vld [vmem:[#allocation8 + $0x70] sm:$0xf0]  ;;  %v1999_v24 = vld [vmem:[#allocation8 + $0x68] sm:$0xf]  ;;  %v2213_v25 = vld [vmem:[#allocation8 + $0x74] sm:$0xf0]  ;;  %277 = vperm.xlu2 %2319, %v2751_v14   ;;  %v2767_v29 = vor.u32 %v2212_v20, %v1991_v16 }
  0x42   :  { %756 = vmatpush.bf16.msrb.mxu0 %v2719_v41  ;;  %538 = vmatmul.bf16.vlgmr.msra.gmra.mxu1 %v356_v51  ;;  %v2211_v26 = vld [vmem:[#allocation8 + $0x6c] sm:$0xf]  ;;  %v2001_v27 = vld [vmem:[#allocation8 + $0x78] sm:$0xf0]  ;;  %v2772_v30 = vor.u32 %v2210_v21, %v1993_v22  ;;  %v2774_v31 = vor.u32 %v2213_v25, %v1999_v24  ;;  %v1975_v32 = vld [vmem:[#allocation8 + $0x40] sm:$0xf] }
  0x43   :  { %769 = vmatpush.bf16.msrb.mxu1 %v2721_v42  ;;  %551 = vmatmul.bf16.vlgmr.msra.gmra.mxu2 %v356_v51  ;;  %v2208_v33 = vld [vmem:[#allocation8 + $0x4c] sm:$0xf0]  ;;  %v2206_v34 = vld [vmem:[#allocation8 + $0x44] sm:$0xf]  ;;  %v2777_v35 = vor.u32 %v2211_v26, %v2001_v27  ;;  %v1977_v36 = vld [vmem:[#allocation8 + $0x50] sm:$0xf0] }
  0x44   :  { %782 = vmatpush.bf16.msrb.mxu2 %v2723_v43  ;;  %795 = vmatpush.bf16.msrb.mxu3 %v2725_v47  ;;  %v1983_v37 = vld [vmem:[#allocation8 + $0x48] sm:$0xf]  ;;  %v2209_v38 = vld [vmem:[#allocation8 + $0x54] sm:$0xf0]  ;;  %v2207_v39 = vld [vmem:[#allocation8 + $0x4c] sm:$0xf]  ;;  %v2780_v44 = vor.u32 %v2208_v33, %v1975_v32  ;;  %v2784_v45 = vor.u32 %v2206_v34, %v1977_v36 }
  0x45   :  { %564 = vmatmul.bf16.vlgmr.msra.gmra.mxu3 %v356_v51  ;;  %2315 = vset.pattern.permute.xlu0 %v2640_v28  ;;  %v1985_v40 = vld [vmem:[#allocation8 + $0x58] sm:$0xf0]  ;;  %v2786_v46 = vor.u32 %v2209_v38, %v1983_v37  ;;  %v1959_v48 = vld [vmem:[#allocation8 + $0x20] sm:$0xf]  ;;  %v2204_v49 = vld [vmem:[#allocation8 + $0x2c] sm:$0xf0] }
  0x46   :  { %757 = vmatpush.bf16.msrb.mxu0 %v2728_v54  ;;  %205 = vperm.xlu0 %2315, %v2751_v14   ;;  %v2202_v50 = vld [vmem:[#allocation8 + $0x24] sm:$0xf]  ;;  %v2789_v51 = vor.u32 %v2207_v39, %v1985_v40  ;;  %v1961_v52 = vld [vmem:[#allocation8 + $0x30] sm:$0xf0]  ;;  %v1967_v53 = vld [vmem:[#allocation8 + $0x28] sm:$0xf]  ;;  %v2793_v62 = vor.u32 %v2204_v49, %v1959_v48 }
  0x47   :  { %770 = vmatpush.bf16.msrb.mxu1 %v2732_v55  ;;  %v2205_v57 = vld [vmem:[#allocation8 + $0x34] sm:$0xf0]  ;;  %v2641_v58 = vmov 5   ;;  %v2203_v59 = vld [vmem:[#allocation8 + $0x2c] sm:$0xf]  ;;  %v2797_v63 = vor.u32 %v2202_v50, %v1961_v52  ;;  %v199_v17 = vld [vmem:[#allocation6] sm:$0xff] }
  0x48   :  { %783 = vmatpush.bf16.msrb.mxu2 %v2734_v56  ;;  %796 = vmatpush.bf16.msrb.mxu3 %v2737_v60  ;;  %v1969_v61 = vld [vmem:[#allocation8 + $0x38] sm:$0xf0]  ;;  %v2799_v0 = vor.u32 %v2205_v57, %v1967_v53  ;;  %v1943_v1 = vld [vmem:[#allocation8] sm:$0xf]  ;;  %v2200_v5 = vld [vmem:[#allocation8 + $0xc] sm:$0xf0]  ;;  %v595_v24 = vpack.c.bf16 %v199_v17, %v199_v17 }
  0x49   :  { %2320 = vset.pattern.permute.xlu2 %v2641_v58  ;;  %v2198_v6 = vld [vmem:[#allocation8 + $0x4] sm:$0xf]  ;;  %v2802_v7 = vor.u32 %v2203_v59, %v1969_v61  ;;  %v1945_v9 = vld [vmem:[#allocation8 + $0x10] sm:$0xf0]  ;;  %v1951_v10 = vld [vmem:[#allocation8 + $0x8] sm:$0xf]  ;;  %v2805_v16 = vor.u32 %v2200_v5, %v1943_v1 }
  0x4a   :  { %758 = vmatpush.bf16.msrb.mxu0 %v2740_v2  ;;  %293 = vperm.xlu2 %2320, %v2751_v14   ;;  %v2201_v11 = vld [vmem:[#allocation8 + $0x14] sm:$0xf0]  ;;  %v2199_v12 = vld [vmem:[#allocation8 + $0xc] sm:$0xf]  ;;  %v1953_v13 = vld [vmem:[#allocation8 + $0x18] sm:$0xf0]  ;;  %v2809_v20 = vor.u32 %v2198_v6, %v1945_v9 }
  0x4b   :  { %771 = vmatpush.bf16.msrb.mxu1 %v2744_v3  ;;  %v2811_v21 = vor.u32 %v2201_v11, %v1951_v10  ;;  %v2814_v22 = vor.u32 %v2199_v12, %v1953_v13  ;;  %v2642_v25 = vmov 7   ;;  %v131_v28 = vld [vmem:[#allocation9] sm:$0xff]  ;;  %v132_v32 = vld [vmem:[#allocation9 + $0x8] sm:$0xff]  ;;  %v2892_v37 = vld [vmem:[#allocation9 + $0x10] sm:$0xff]  ;;  %s2648_s4 = smov [#allocation15]   ;;  %s1800_s1 = sshll.u32 %s3224_s7, 4  ;;  %s1801_s1 = int_to_ptr.hbm [resolvable:$true] %s1800_s1 }
  0x4c   :  { %784 = vmatpush.bf16.msrb.mxu2 %v2746_v4  ;;  %797 = vmatpush.bf16.msrb.mxu3 %v2749_v8  ;;  %v340_v33 = vperm.slane %v131_v28, 2  ;;  %v341_v34 = vperm.slane %v132_v32, 2  ;;  %v348_v39 = vperm.slane %v131_v28, 3  ;;  %v349_v48 = vperm.slane %v132_v32, 3  ;;  %v2896_v49 = vld [vmem:[#allocation9 + $0x18] sm:$0xff]  ;;  %s1798_s6 = sshll.u32 %s2648_s4, 4  ;;  %s1799_s6 = int_to_ptr.vmem [resolvable:$true] %s1798_s6 }
  0x4d   :  { %v342_v50 = vperm.slane %v2892_v37, 2  ;;  %v343_v53 = vperm.slane %v2896_v49, 2  ;;  %v350_v61 = vperm.slane %v2892_v37, 3  ;;  %v351_v9 = vperm.slane %v2896_v49, 3 }
  0x4e   :  { %759 = vmatpush.bf16.msrb.mxu0 %v2754_v15 }
  0x4f   :  { %772 = vmatpush.bf16.msrb.mxu1 %v2758_v18 }
  0x50   :  { %785 = vmatpush.bf16.msrb.mxu2 %v2760_v19  ;;  %798 = vmatpush.bf16.msrb.mxu3 %v2763_v23 }
  0x52   :  { %760 = vmatpush.bf16.msrb.mxu0 %v2767_v29  ;;  %2322 = vset.pattern.permute.xlu2 %v2642_v25 }
  0x53   :  { %773 = vmatpush.bf16.msrb.mxu1 %v2772_v30  ;;  %325 = vperm.xlu2 %2322, %v2751_v14  }
  0x54   :  { %786 = vmatpush.bf16.msrb.mxu2 %v2774_v31  ;;  %799 = vmatpush.bf16.msrb.mxu3 %v2777_v35 }
  0x56   :  { %761 = vmatpush.bf16.msrb.mxu0 %v2780_v44 }
  0x57   :  { %774 = vmatpush.bf16.msrb.mxu1 %v2784_v45 }
  0x58   :  { %787 = vmatpush.bf16.msrb.mxu2 %v2786_v46  ;;  %800 = vmatpush.bf16.msrb.mxu3 %v2789_v51 }
  0x5a   :  { %762 = vmatpush.bf16.msrb.mxu0 %v2793_v62 }
  0x5b   :  { %775 = vmatpush.bf16.msrb.mxu1 %v2797_v63 }
  0x5c   :  { %788 = vmatpush.bf16.msrb.mxu2 %v2799_v0  ;;  %801 = vmatpush.bf16.msrb.mxu3 %v2802_v7 }
  0x5e   :  { %763 = vmatpush.bf16.msrb.mxu0 %v2805_v16 }
  0x5f   :  { %776 = vmatpush.bf16.msrb.mxu1 %v2809_v20 }
  0x60   :  { %789 = vmatpush.bf16.msrb.mxu2 %v2811_v21  ;;  %802 = vmatpush.bf16.msrb.mxu3 %v2814_v22 }
  0x61   :  { %764 = vmatmul.bf16.vlgmr.msrb.gmra.mxu0 %v595_v24 }
  0x62   :  { %835 = vmatpush.bf16.msra.mxu0 %v2719_v41  ;;  %777 = vmatmul.bf16.vlgmr.msrb.gmra.mxu1 %v595_v24 }
  0x63   :  { %848 = vmatpush.bf16.msra.mxu1 %v2721_v42  ;;  %790 = vmatmul.bf16.vlgmr.msrb.gmra.mxu2 %v595_v24 }
  0x64   :  { %803 = vmatmul.bf16.vlgmr.msrb.gmra.mxu3 %v595_v24  ;;  %861 = vmatpush.bf16.msra.mxu2 %v2723_v43 }
  0x65   :  { %874 = vmatpush.bf16.msra.mxu3 %v2725_v47 }
  0x66   :  { %836 = vmatpush.bf16.msra.mxu0 %v2728_v54 }
  0x67   :  { %849 = vmatpush.bf16.msra.mxu1 %v2732_v55 }
  0x68   :  { %862 = vmatpush.bf16.msra.mxu2 %v2734_v56 }
  0x69   :  { %875 = vmatpush.bf16.msra.mxu3 %v2737_v60 }
  0x6a   :  { %837 = vmatpush.bf16.msra.mxu0 %v2740_v2 }
  0x6b   :  { %850 = vmatpush.bf16.msra.mxu1 %v2744_v3 }
  0x6c   :  { %863 = vmatpush.bf16.msra.mxu2 %v2746_v4 }
  0x6d   :  { %876 = vmatpush.bf16.msra.mxu3 %v2749_v8 }
  0x6e   :  { %838 = vmatpush.bf16.msra.mxu0 %v2754_v15 }
  0x6f   :  { %851 = vmatpush.bf16.msra.mxu1 %v2758_v18 }
  0x70   :  { %864 = vmatpush.bf16.msra.mxu2 %v2760_v19 }
  0x71   :  { %877 = vmatpush.bf16.msra.mxu3 %v2763_v23 }
  0x72   :  { %839 = vmatpush.bf16.msra.mxu0 %v2767_v29 }
  0x73   :  { %852 = vmatpush.bf16.msra.mxu1 %v2772_v30 }
  0x74   :  { %865 = vmatpush.bf16.msra.mxu2 %v2774_v31 }
  0x75   :  { %878 = vmatpush.bf16.msra.mxu3 %v2777_v35 }
  0x76   :  { %840 = vmatpush.bf16.msra.mxu0 %v2780_v44 }
  0x77   :  { %853 = vmatpush.bf16.msra.mxu1 %v2784_v45 }
  0x78   :  { %866 = vmatpush.bf16.msra.mxu2 %v2786_v46 }
  0x79   :  { %879 = vmatpush.bf16.msra.mxu3 %v2789_v51 }
  0x7a   :  { %841 = vmatpush.bf16.msra.mxu0 %v2793_v62 }
  0x7b   :  { %854 = vmatpush.bf16.msra.mxu1 %v2797_v63 }
  0x7c   :  { %867 = vmatpush.bf16.msra.mxu2 %v2799_v0 }
  0x7d   :  { %880 = vmatpush.bf16.msra.mxu3 %v2802_v7 }
  0x7e   :  { %842 = vmatpush.bf16.msra.mxu0 %v2805_v16 }
  0x7f   :  { %855 = vmatpush.bf16.msra.mxu1 %v2809_v20 }
  0x80   :  { %868 = vmatpush.bf16.msra.mxu2 %v2811_v21 }
  0x81   :  { %881 = vmatpush.bf16.msra.mxu3 %v2814_v22 }
  0x82   :  { %914 = vmatpush.bf16.msrb.mxu0 %v2719_v41 }
  0x83   :  { %927 = vmatpush.bf16.msrb.mxu1 %v2721_v42 }
  0x84   :  { %940 = vmatpush.bf16.msrb.mxu2 %v2723_v43 }
  0x85   :  { %953 = vmatpush.bf16.msrb.mxu3 %v2725_v47 }
  0x86   :  { %915 = vmatpush.bf16.msrb.mxu0 %v2728_v54 }
  0x87   :  { %928 = vmatpush.bf16.msrb.mxu1 %v2732_v55 }
  0x88   :  { %941 = vmatpush.bf16.msrb.mxu2 %v2734_v56 }
  0x89   :  { %954 = vmatpush.bf16.msrb.mxu3 %v2737_v60 }
  0x8a   :  { %916 = vmatpush.bf16.msrb.mxu0 %v2740_v2 }
  0x8b   :  { %929 = vmatpush.bf16.msrb.mxu1 %v2744_v3 }
  0x8c   :  { %942 = vmatpush.bf16.msrb.mxu2 %v2746_v4 }
  0x8d   :  { %955 = vmatpush.bf16.msrb.mxu3 %v2749_v8 }
  0x8e   :  { %917 = vmatpush.bf16.msrb.mxu0 %v2754_v15 }
  0x8f   :  { %930 = vmatpush.bf16.msrb.mxu1 %v2758_v18 }
  0x90   :  { %943 = vmatpush.bf16.msrb.mxu2 %v2760_v19 }
  0x91   :  { %956 = vmatpush.bf16.msrb.mxu3 %v2763_v23 }
  0x92   :  { %918 = vmatpush.bf16.msrb.mxu0 %v2767_v29 }
  0x93   :  { %931 = vmatpush.bf16.msrb.mxu1 %v2772_v30 }
  0x94   :  { %944 = vmatpush.bf16.msrb.mxu2 %v2774_v31 }
  0x95   :  { %957 = vmatpush.bf16.msrb.mxu3 %v2777_v35 }
  0x96   :  { %919 = vmatpush.bf16.msrb.mxu0 %v2780_v44 }
  0x97   :  { %932 = vmatpush.bf16.msrb.mxu1 %v2784_v45 }
  0x98   :  { %945 = vmatpush.bf16.msrb.mxu2 %v2786_v46 }
  0x99   :  { %958 = vmatpush.bf16.msrb.mxu3 %v2789_v51 }
  0x9a   :  { %920 = vmatpush.bf16.msrb.mxu0 %v2793_v62 }
  0x9b   :  { %933 = vmatpush.bf16.msrb.mxu1 %v2797_v63  ;;  %v2886_v26 = vpop.permute.xlu2 %277 }
  0x9c   :  { %946 = vmatpush.bf16.msrb.mxu2 %v2799_v0 }
  0x9d   :  { %959 = vmatpush.bf16.msrb.mxu3 %v2802_v7 }
  0x9e   :  { %921 = vmatpush.bf16.msrb.mxu0 %v2805_v16 }
  0x9f   :  { %934 = vmatpush.bf16.msrb.mxu1 %v2809_v20 }
  0xa0   :  { %947 = vmatpush.bf16.msrb.mxu2 %v2811_v21 }
  0xa1   :  { %960 = vmatpush.bf16.msrb.mxu3 %v2814_v22 }
  0xa4   :  { %v2888_v27 = vpop.permute.xlu2 %293 }
  0xa5   :  { %3228 = vst [vmem:[#allocation21_spill] sm:$0xff] %v2888_v27 }
  0xad   :  { %v2890_v36 = vpop.permute.xlu2 %325 }
  0xae   :  { %3229 = vst [vmem:[#allocation22_spill] sm:$0xff] %v2890_v36  ;;  %v344_v38 = vmul.f32 %v340_v33, %v2890_v36  ;;  %v345_v40 = vmul.f32 %v341_v34, %v2890_v36  ;;  %v346_v59 = vmul.f32 %v342_v50, %v2890_v36  ;;  %v347_v6 = vmul.f32 %v343_v53, %v2890_v36 }
  0xb0   :  { %v352_v52 = vadd.f32 %v348_v39, %v344_v38  ;;  %v353_v57 = vadd.f32 %v349_v48, %v345_v40  ;;  %v354_v12 = vadd.f32 %v350_v61, %v346_v59  ;;  %v355_v17 = vadd.f32 %v351_v9, %v347_v6 }
  0xbe   :  { %v526_v58 = vpop.f32.mrf.mxu0 }
  0xbf   :  { %v539_v1 = vpop.f32.mrf.mxu1  ;;  %v569_v5 = vadd.f32 %v526_v58, %v352_v52 }
  0xc0   :  { %v570_v10 = vadd.f32 %v539_v1, %v353_v57  ;;  %v202_v57 = vld [vmem:[#allocation6 + $0x18] sm:$0xff] }
  0xc1   :  { %v573_v11 = vmul.f32 0.5, %v569_v5 }
  0xc2   :  { %v577_v13 = vmul.f32 0.5, %v570_v10 }
  0xc3   :  { %2324 = vtanh.f32 %v573_v11  ;;  %v2904_v11 = vperm.slane %v131_v28, 0 }
  0xc4   :  { %2326 = vtanh.f32 %v577_v13 }
  0xc6   :  { %v552_v24 = vpop.f32.mrf.mxu2  ;;  %v528_v34 = vpop.f32.mrf.mxu0 }
  0xc7   :  { %v571_v33 = vadd.f32 %v552_v24, %v354_v12  ;;  %v541_v39 = vpop.f32.mrf.mxu1  ;;  %v2906_v24 = vperm.slane %v132_v32, 0 }
  0xc8   :  { %v565_v38 = vpop.f32.mrf.mxu3 }
  0xc9   :  { %v572_v40 = vadd.f32 %v565_v38, %v355_v17  ;;  %2328 = vtanh.f32 %v571_v33  ;;  %v2325_v48 = vpop.eup %2324  ;;  %v206_v17 = vpop.permute.xlu0 %205  ;;  %v2909_v38 = vperm.slane %v131_v28, 1 }
  0xca   :  { %v2327_v52 = vpop.eup %2326  ;;  %v575_v53 = vadd.f32 1.0, %v2325_v48  ;;  %v212_v34 = vmul.f32 %v2904_v11, %v206_v17  ;;  %v213_v39 = vmul.f32 %v2906_v24, %v206_v17 }
  0xcb   :  { %v582_v50 = vmul.f32 0.5, %v572_v40  ;;  %v579_v58 = vadd.f32 1.0, %v2327_v52  ;;  %v2912_v40 = vperm.slane %v132_v32, 1  ;;  %v2925_v32 = vperm.slane %v2892_v37, 1 }
  0xcc   :  { %v576_v1 = vmul.f32 0.5, %v575_v53  ;;  %v2916_v53 = vperm.slane %v2892_v37, 0 }
  0xcd   :  { %2330 = vtanh.f32 %v582_v50  ;;  %v580_v59 = vmul.f32 0.5, %v579_v58  ;;  %v220_v50 = vadd.f32 %v2909_v38, %v212_v34  ;;  %v221_v58 = vadd.f32 %v2912_v40, %v213_v39 }
  0xce   :  { %v554_v61 = vpop.f32.mrf.mxu2 }
  0xcf   :  { %v2329_v5 = vpop.eup %2328  ;;  %v586_v9 = vmul.f32 %v580_v59, %v202_v57  ;;  %v2920_v57 = vperm.slane %v2896_v49, 0 }
  0xd0   :  { %v567_v6 = vpop.f32.mrf.mxu3  ;;  %v587_v10 = vmul.f32 %v2329_v5, %v576_v1 }
  0xd1   :  { %v214_v6 = vmul.f32 %v2916_v53, %v206_v17 }
  0xd2   :  { %v588_v13 = vadd.f32 %v587_v10, %v586_v9  ;;  %v2643_v9 = vmov 1   ;;  %v2929_v10 = vperm.slane %v2896_v49, 1 }
  0xd3   :  { %v2331_v12 = vpop.eup %2330  ;;  %2316 = vset.pattern.permute.xlu0 %v2643_v9  ;;  %v222_v34 = vadd.f32 %v2925_v32, %v214_v6 }
  0xd4   :  { %v584_v33 = vadd.f32 1.0, %v2331_v12  ;;  %2332 = vtanh.f32 %v588_v13  ;;  %v215_v13 = vmul.f32 %v2920_v57, %v206_v17  ;;  %229 = vperm.xlu0 %2316, %v2751_v14  }
  0xd6   :  { %v585_v48 = vmul.f32 0.5, %v584_v33  ;;  %v223_v39 = vadd.f32 %v2929_v10, %v215_v13 }
  0xda   :  { %v2333_v52 = vpop.eup %2332 }
  0xdb   :  { %v2922_v1 = vmul.f32 %v2333_v52, %v585_v48 }
  0xdc   :  { %2323 = vset.pattern.permute.xlu0 %v2642_v25 }
  0xdd   :  { %3230 = vst [vmem:[#allocation23_spill] sm:$0xff] %v2922_v1 }
  0xde   :  { %v765_v28 = vpop.f32.mrf.mxu0 }
  0xdf   :  { %v808_v59 = vadd.f32 %v765_v28, %v220_v50  ;;  %v778_v61 = vpop.f32.mrf.mxu1 }
  0xe0   :  { %v809_v5 = vadd.f32 %v778_v61, %v221_v58 }
  0xe1   :  { %v812_v12 = vmul.f32 0.5, %v808_v59 }
  0xe2   :  { %v816_v33 = vmul.f32 0.5, %v809_v5 }
  0xe3   :  { %2334 = vtanh.f32 %v812_v12  ;;  %v200_v12 = vld [vmem:[#allocation6 + $0x8] sm:$0xff] }
  0xe4   :  { %2336 = vtanh.f32 %v816_v33 }
  0xe6   :  { %v791_v37 = vpop.f32.mrf.mxu2  ;;  %v767_v52 = vpop.f32.mrf.mxu0 }
  0xe7   :  { %v810_v48 = vadd.f32 %v791_v37, %v222_v34  ;;  %v804_v50 = vpop.f32.mrf.mxu3  ;;  %v780_v28 = vpop.f32.mrf.mxu1 }
  0xe8   :  { %v811_v58 = vadd.f32 %v804_v50, %v223_v39 }
  0xe9   :  { %2338 = vtanh.f32 %v810_v48  ;;  %v2335_v49 = vpop.eup %2334 }
  0xea   :  { %v821_v59 = vmul.f32 0.5, %v811_v58  ;;  %v2337_v17 = vpop.eup %2336  ;;  %v814_v61 = vadd.f32 1.0, %v2335_v49 }
  0xeb   :  { %v818_v5 = vadd.f32 1.0, %v2337_v17 }
  0xec   :  { %2340 = vtanh.f32 %v821_v59  ;;  %v815_v9 = vmul.f32 0.5, %v814_v61 }
  0xed   :  { %v819_v6 = vmul.f32 0.5, %v818_v5 }
  0xee   :  { %v793_v33 = vpop.f32.mrf.mxu2 }
  0xef   :  { %v2339_v36 = vpop.eup %2338  ;;  %v806_v13 = vpop.f32.mrf.mxu3  ;;  %v825_v34 = vmul.f32 %v819_v6, %v200_v12 }
  0xf0   :  { %v826_v37 = vmul.f32 %v2339_v36, %v815_v9 }
  0xf2   :  { %v2341_v52 = vpop.eup %2340  ;;  %v2936_v39 = vadd.f32 %v826_v37, %v825_v34  ;;  %v2644_v34 = vmov 2  }
  0xf3   :  { %v823_v48 = vadd.f32 1.0, %v2341_v52  ;;  %2317 = vset.pattern.permute.xlu1 %v2644_v34 }
  0xf4   :  { %2342 = vtanh.f32 %v2936_v39  ;;  %245 = vperm.xlu1 %2317, %v2751_v14  }
  0xf5   :  { %v824_v50 = vmul.f32 0.5, %v823_v48 }
  0xfa   :  { %v2343_v25 = vpop.eup %2342 }
  0xfb   :  { %v829_v58 = vmul.f32 %v2343_v25, %v824_v50 }
  0xfd   :  { %v834_v28 = vpack.c.bf16 %v829_v58, %v829_v58 }
  0xff   :  { %843 = vmatmul.bf16.vlgmr.msra.gmra.mxu0 %v834_v28  ;;  %856 = vmatmul.bf16.vlgmr.msra.gmra.mxu1 %v834_v28 }
 0x100   :  { %869 = vmatmul.bf16.vlgmr.msra.gmra.mxu2 %v834_v28  ;;  %882 = vmatmul.bf16.vlgmr.msra.gmra.mxu3 %v834_v28 }
 0x101   :  { %993 = vmatpush.bf16.msra.mxu0 %v2719_v41  ;;  %1006 = vmatpush.bf16.msra.mxu1 %v2721_v42 }
 0x102   :  { %1019 = vmatpush.bf16.msra.mxu2 %v2723_v43  ;;  %1032 = vmatpush.bf16.msra.mxu3 %v2725_v47 }
 0x105   :  { %994 = vmatpush.bf16.msra.mxu0 %v2728_v54  ;;  %1007 = vmatpush.bf16.msra.mxu1 %v2732_v55 }
 0x106   :  { %1020 = vmatpush.bf16.msra.mxu2 %v2734_v56  ;;  %1033 = vmatpush.bf16.msra.mxu3 %v2737_v60 }
 0x109   :  { %995 = vmatpush.bf16.msra.mxu0 %v2740_v2  ;;  %1008 = vmatpush.bf16.msra.mxu1 %v2744_v3 }
 0x10a   :  { %1021 = vmatpush.bf16.msra.mxu2 %v2746_v4  ;;  %1034 = vmatpush.bf16.msra.mxu3 %v2749_v8 }
 0x10d   :  { %996 = vmatpush.bf16.msra.mxu0 %v2754_v15  ;;  %1009 = vmatpush.bf16.msra.mxu1 %v2758_v18 }
 0x10e   :  { %1022 = vmatpush.bf16.msra.mxu2 %v2760_v19  ;;  %1035 = vmatpush.bf16.msra.mxu3 %v2763_v23 }
 0x111   :  { %997 = vmatpush.bf16.msra.mxu0 %v2767_v29  ;;  %1010 = vmatpush.bf16.msra.mxu1 %v2772_v30 }
 0x112   :  { %1023 = vmatpush.bf16.msra.mxu2 %v2774_v31  ;;  %1036 = vmatpush.bf16.msra.mxu3 %v2777_v35 }
 0x115   :  { %998 = vmatpush.bf16.msra.mxu0 %v2780_v44  ;;  %1011 = vmatpush.bf16.msra.mxu1 %v2784_v45 }
 0x116   :  { %1024 = vmatpush.bf16.msra.mxu2 %v2786_v46  ;;  %1037 = vmatpush.bf16.msra.mxu3 %v2789_v51 }
 0x119   :  { %999 = vmatpush.bf16.msra.mxu0 %v2793_v62  ;;  %1012 = vmatpush.bf16.msra.mxu1 %v2797_v63 }
 0x11a   :  { %1025 = vmatpush.bf16.msra.mxu2 %v2799_v0  ;;  %1038 = vmatpush.bf16.msra.mxu3 %v2802_v7 }
 0x11d   :  { %1000 = vmatpush.bf16.msra.mxu0 %v2805_v16  ;;  %1013 = vmatpush.bf16.msra.mxu1 %v2809_v20 }
 0x11e   :  { %1026 = vmatpush.bf16.msra.mxu2 %v2811_v21  ;;  %1039 = vmatpush.bf16.msra.mxu3 %v2814_v22 }
 0x146   :  { %v230_v36 = vpop.permute.xlu0 %229 }
 0x147   :  { %v232_v49 = vmul.f32 %v230_v36, %v2904_v11  ;;  %v233_v59 = vmul.f32 %v230_v36, %v2906_v24  ;;  %v234_v33 = vmul.f32 %v230_v36, %v2916_v53  ;;  %v235_v13 = vmul.f32 %v230_v36, %v2920_v57 }
 0x149   :  { %v236_v17 = vadd.f32 %v232_v49, %v2909_v38  ;;  %v237_v61 = vadd.f32 %v233_v59, %v2912_v40  ;;  %v238_v48 = vadd.f32 %v234_v33, %v2925_v32  ;;  %v239_v50 = vadd.f32 %v235_v13, %v2929_v10 }
 0x17c   :  { %v844_v5 = vpop.f32.mrf.mxu0  ;;  %v857_v9 = vpop.f32.mrf.mxu1 }
 0x17d   :  { %v887_v12 = vadd.f32 %v844_v5, %v236_v17  ;;  %v888_v6 = vadd.f32 %v857_v9, %v237_v61 }
 0x17f   :  { %v891_v37 = vmul.f32 0.5, %v887_v12  ;;  %v895_v52 = vmul.f32 0.5, %v888_v6 }
 0x181   :  { %2344 = vtanh.f32 %v891_v37 }
 0x182   :  { %2346 = vtanh.f32 %v895_v52 }
 0x183   :  { %v870_v25 = vpop.f32.mrf.mxu2  ;;  %v883_v58 = vpop.f32.mrf.mxu3 }
 0x184   :  { %v889_v28 = vadd.f32 %v870_v25, %v238_v48  ;;  %v890_v49 = vadd.f32 %v883_v58, %v239_v50  ;;  %v846_v59 = vpop.f32.mrf.mxu0  ;;  %v859_v17 = vpop.f32.mrf.mxu1 }
 0x186   :  { %2348 = vtanh.f32 %v889_v28  ;;  %v900_v36 = vmul.f32 0.5, %v890_v49 }
 0x187   :  { %v2345_v61 = vpop.eup %2344 }
 0x188   :  { %v2347_v5 = vpop.eup %2346  ;;  %v893_v9 = vadd.f32 1.0, %v2345_v61  ;;  %2350 = vtanh.f32 %v900_v36 }
 0x189   :  { %v897_v12 = vadd.f32 1.0, %v2347_v5 }
 0x18a   :  { %v894_v6 = vmul.f32 0.5, %v893_v9 }
 0x18b   :  { %v898_v34 = vmul.f32 0.5, %v897_v12  ;;  %v872_v37 = vpop.f32.mrf.mxu2  ;;  %v885_v52 = vpop.f32.mrf.mxu3 }
 0x18c   :  { %v2349_v33 = vpop.eup %2348 }
 0x18d   :  { %v904_v13 = vmul.f32 %v898_v34, %v2936_v39  ;;  %v905_v1 = vmul.f32 %v2349_v33, %v894_v6  ;;  %v2645_v34 = vmov 3  }
 0x18e   :  { %v2351_v27 = vpop.eup %2350  ;;  %2318 = vset.pattern.permute.xlu1 %v2645_v34 }
 0x18f   :  { %v2981_v48 = vadd.f32 %v905_v1, %v904_v13  ;;  %v902_v50 = vadd.f32 1.0, %v2351_v27  ;;  %v246_v27 = vpop.permute.xlu1 %245  ;;  %261 = vperm.xlu1 %2318, %v2751_v14  }
 0x190   :  { %v248_v1 = vmul.f32 %v246_v27, %v2904_v11  ;;  %v249_v39 = vmul.f32 %v246_v27, %v2906_v24  ;;  %v250_v12 = vmul.f32 %v246_v27, %v2916_v53  ;;  %v251_v6 = vmul.f32 %v246_v27, %v2920_v57 }
 0x191   :  { %2352 = vtanh.f32 %v2981_v48  ;;  %v903_v25 = vmul.f32 0.5, %v902_v50 }
 0x192   :  { %v252_v59 = vadd.f32 %v248_v1, %v2909_v38  ;;  %v253_v17 = vadd.f32 %v249_v39, %v2912_v40  ;;  %v254_v33 = vadd.f32 %v250_v12, %v2925_v32  ;;  %v255_v13 = vadd.f32 %v251_v6, %v2929_v10 }
 0x197   :  { %v2353_v58 = vpop.eup %2352 }
 0x198   :  { %v908_v28 = vmul.f32 %v2353_v58, %v903_v25 }
 0x19a   :  { %v913_v49 = vpack.c.bf16 %v908_v28, %v908_v28 }
 0x19c   :  { %922 = vmatmul.bf16.vlgmr.msrb.gmra.mxu0 %v913_v49  ;;  %935 = vmatmul.bf16.vlgmr.msrb.gmra.mxu1 %v913_v49 }
 0x19d   :  { %948 = vmatmul.bf16.vlgmr.msrb.gmra.mxu2 %v913_v49  ;;  %961 = vmatmul.bf16.vlgmr.msrb.gmra.mxu3 %v913_v49 }
 0x19e   :  { %1072 = vmatpush.bf16.msrb.mxu0 %v2719_v41  ;;  %1085 = vmatpush.bf16.msrb.mxu1 %v2721_v42 }
 0x19f   :  { %1098 = vmatpush.bf16.msrb.mxu2 %v2723_v43  ;;  %1111 = vmatpush.bf16.msrb.mxu3 %v2725_v47 }
 0x1a2   :  { %1073 = vmatpush.bf16.msrb.mxu0 %v2728_v54  ;;  %1086 = vmatpush.bf16.msrb.mxu1 %v2732_v55 }
 0x1a3   :  { %1099 = vmatpush.bf16.msrb.mxu2 %v2734_v56  ;;  %1112 = vmatpush.bf16.msrb.mxu3 %v2737_v60 }
 0x1a6   :  { %1074 = vmatpush.bf16.msrb.mxu0 %v2740_v2  ;;  %1087 = vmatpush.bf16.msrb.mxu1 %v2744_v3 }
 0x1a7   :  { %1100 = vmatpush.bf16.msrb.mxu2 %v2746_v4  ;;  %1113 = vmatpush.bf16.msrb.mxu3 %v2749_v8 }
 0x1aa   :  { %1075 = vmatpush.bf16.msrb.mxu0 %v2754_v15  ;;  %1088 = vmatpush.bf16.msrb.mxu1 %v2758_v18 }
 0x1ab   :  { %1101 = vmatpush.bf16.msrb.mxu2 %v2760_v19  ;;  %1114 = vmatpush.bf16.msrb.mxu3 %v2763_v23 }
 0x1ae   :  { %1076 = vmatpush.bf16.msrb.mxu0 %v2767_v29  ;;  %1089 = vmatpush.bf16.msrb.mxu1 %v2772_v30 }
 0x1af   :  { %1102 = vmatpush.bf16.msrb.mxu2 %v2774_v31  ;;  %1115 = vmatpush.bf16.msrb.mxu3 %v2777_v35 }
 0x1b2   :  { %1077 = vmatpush.bf16.msrb.mxu0 %v2780_v44  ;;  %1090 = vmatpush.bf16.msrb.mxu1 %v2784_v45 }
 0x1b3   :  { %1103 = vmatpush.bf16.msrb.mxu2 %v2786_v46  ;;  %1116 = vmatpush.bf16.msrb.mxu3 %v2789_v51 }
 0x1b6   :  { %1078 = vmatpush.bf16.msrb.mxu0 %v2793_v62  ;;  %1091 = vmatpush.bf16.msrb.mxu1 %v2797_v63 }
 0x1b7   :  { %1104 = vmatpush.bf16.msrb.mxu2 %v2799_v0  ;;  %1117 = vmatpush.bf16.msrb.mxu3 %v2802_v7 }
 0x1ba   :  { %1079 = vmatpush.bf16.msrb.mxu0 %v2805_v16  ;;  %1092 = vmatpush.bf16.msrb.mxu1 %v2809_v20 }
 0x1bb   :  { %1105 = vmatpush.bf16.msrb.mxu2 %v2811_v21  ;;  %1118 = vmatpush.bf16.msrb.mxu3 %v2814_v22 }
 0x219   :  { %v923_v36 = vpop.f32.mrf.mxu0  ;;  %v936_v61 = vpop.f32.mrf.mxu1 }
 0x21a   :  { %v966_v5 = vadd.f32 %v923_v36, %v252_v59  ;;  %v967_v9 = vadd.f32 %v936_v61, %v253_v17 }
 0x21c   :  { %v970_v37 = vmul.f32 0.5, %v966_v5  ;;  %v974_v52 = vmul.f32 0.5, %v967_v9 }
 0x21e   :  { %2354 = vtanh.f32 %v970_v37 }
 0x21f   :  { %2356 = vtanh.f32 %v974_v52 }
 0x220   :  { %v949_v50 = vpop.f32.mrf.mxu2  ;;  %v962_v25 = vpop.f32.mrf.mxu3 }
 0x221   :  { %v968_v58 = vadd.f32 %v949_v50, %v254_v33  ;;  %v969_v28 = vadd.f32 %v962_v25, %v255_v13  ;;  %v925_v49 = vpop.f32.mrf.mxu0  ;;  %v938_v1 = vpop.f32.mrf.mxu1 }
 0x223   :  { %2358 = vtanh.f32 %v968_v58  ;;  %v979_v27 = vmul.f32 0.5, %v969_v28 }
 0x224   :  { %v2355_v39 = vpop.eup %2354 }
 0x225   :  { %v2357_v59 = vpop.eup %2356  ;;  %v972_v17 = vadd.f32 1.0, %v2355_v39  ;;  %2360 = vtanh.f32 %v979_v27 }
 0x226   :  { %v976_v36 = vadd.f32 1.0, %v2357_v59 }
 0x227   :  { %v973_v14 = vmul.f32 0.5, %v972_v17 }
 0x228   :  { %v977_v61 = vmul.f32 0.5, %v976_v36  ;;  %v951_v5 = vpop.f32.mrf.mxu2  ;;  %v964_v9 = vpop.f32.mrf.mxu3 }
 0x229   :  { %v2359_v12 = vpop.eup %2358 }
 0x22a   :  { %v983_v6 = vmul.f32 %v977_v61, %v2981_v48  ;;  %v984_v34 = vmul.f32 %v2359_v12, %v973_v14  ;;  %v262_v48 = vpop.permute.xlu1 %261 }
 0x22b   :  { %v2361_v37 = vpop.eup %2360  ;;  %v264_v28 = vmul.f32 %v262_v48, %v2904_v11  ;;  %v265_v49 = vmul.f32 %v262_v48, %v2906_v24  ;;  %v266_v14 = vmul.f32 %v262_v48, %v2916_v53  ;;  %v267_v61 = vmul.f32 %v262_v48, %v2920_v57 }
 0x22c   :  { %v3026_v52 = vadd.f32 %v984_v34, %v983_v6  ;;  %v981_v33 = vadd.f32 1.0, %v2361_v37 }
 0x22d   :  { %v268_v1 = vadd.f32 %v264_v28, %v2909_v38  ;;  %v269_v27 = vadd.f32 %v265_v49, %v2912_v40  ;;  %v270_v12 = vadd.f32 %v266_v14, %v2925_v32  ;;  %v271_v6 = vadd.f32 %v267_v61, %v2929_v10 }
 0x22e   :  { %2362 = vtanh.f32 %v3026_v52  ;;  %v982_v13 = vmul.f32 0.5, %v981_v33 }
 0x234   :  { %v2363_v50 = vpop.eup %2362 }
 0x235   :  { %v987_v25 = vmul.f32 %v2363_v50, %v982_v13 }
 0x237   :  { %v992_v58 = vpack.c.bf16 %v987_v25, %v987_v25 }
 0x239   :  { %1001 = vmatmul.bf16.vlgmr.msra.gmra.mxu0 %v992_v58  ;;  %1014 = vmatmul.bf16.vlgmr.msra.gmra.mxu1 %v992_v58 }
 0x23a   :  { %1027 = vmatmul.bf16.vlgmr.msra.gmra.mxu2 %v992_v58  ;;  %1040 = vmatmul.bf16.vlgmr.msra.gmra.mxu3 %v992_v58 }
 0x23b   :  { %1151 = vmatpush.bf16.msra.mxu0 %v2719_v41  ;;  %1164 = vmatpush.bf16.msra.mxu1 %v2721_v42 }
 0x23c   :  { %1177 = vmatpush.bf16.msra.mxu2 %v2723_v43  ;;  %1190 = vmatpush.bf16.msra.mxu3 %v2725_v47 }
 0x23f   :  { %1152 = vmatpush.bf16.msra.mxu0 %v2728_v54  ;;  %1165 = vmatpush.bf16.msra.mxu1 %v2732_v55 }
 0x240   :  { %1178 = vmatpush.bf16.msra.mxu2 %v2734_v56  ;;  %1191 = vmatpush.bf16.msra.mxu3 %v2737_v60 }
 0x243   :  { %1153 = vmatpush.bf16.msra.mxu0 %v2740_v2  ;;  %1166 = vmatpush.bf16.msra.mxu1 %v2744_v3 }
 0x244   :  { %1179 = vmatpush.bf16.msra.mxu2 %v2746_v4  ;;  %1192 = vmatpush.bf16.msra.mxu3 %v2749_v8 }
 0x247   :  { %1154 = vmatpush.bf16.msra.mxu0 %v2754_v15  ;;  %1167 = vmatpush.bf16.msra.mxu1 %v2758_v18 }
 0x248   :  { %1180 = vmatpush.bf16.msra.mxu2 %v2760_v19  ;;  %1193 = vmatpush.bf16.msra.mxu3 %v2763_v23 }
 0x24b   :  { %1155 = vmatpush.bf16.msra.mxu0 %v2767_v29  ;;  %1168 = vmatpush.bf16.msra.mxu1 %v2772_v30 }
 0x24c   :  { %1181 = vmatpush.bf16.msra.mxu2 %v2774_v31  ;;  %1194 = vmatpush.bf16.msra.mxu3 %v2777_v35 }
 0x24f   :  { %1156 = vmatpush.bf16.msra.mxu0 %v2780_v44  ;;  %1169 = vmatpush.bf16.msra.mxu1 %v2784_v45 }
 0x250   :  { %1182 = vmatpush.bf16.msra.mxu2 %v2786_v46  ;;  %1195 = vmatpush.bf16.msra.mxu3 %v2789_v51 }
 0x253   :  { %1157 = vmatpush.bf16.msra.mxu0 %v2793_v62  ;;  %1170 = vmatpush.bf16.msra.mxu1 %v2797_v63 }
 0x254   :  { %1183 = vmatpush.bf16.msra.mxu2 %v2799_v0  ;;  %1196 = vmatpush.bf16.msra.mxu3 %v2802_v7 }
 0x257   :  { %1158 = vmatpush.bf16.msra.mxu0 %v2805_v16  ;;  %1171 = vmatpush.bf16.msra.mxu1 %v2809_v20 }
 0x258   :  { %1184 = vmatpush.bf16.msra.mxu2 %v2811_v21  ;;  %1197 = vmatpush.bf16.msra.mxu3 %v2814_v22 }
 0x2b6   :  { %v1002_v39 = vpop.f32.mrf.mxu0  ;;  %v1015_v59 = vpop.f32.mrf.mxu1 }
 0x2b7   :  { %v1045_v17 = vadd.f32 %v1002_v39, %v268_v1  ;;  %v1046_v36 = vadd.f32 %v1015_v59, %v269_v27 }
 0x2b9   :  { %v1049_v5 = vmul.f32 0.5, %v1045_v17  ;;  %v1053_v9 = vmul.f32 0.5, %v1046_v36 }
 0x2bb   :  { %2364 = vtanh.f32 %v1049_v5 }
 0x2bc   :  { %2366 = vtanh.f32 %v1053_v9 }
 0x2bd   :  { %v1028_v34 = vpop.f32.mrf.mxu2  ;;  %v1041_v37 = vpop.f32.mrf.mxu3 }
 0x2be   :  { %v1047_v33 = vadd.f32 %v1028_v34, %v270_v12  ;;  %v1048_v13 = vadd.f32 %v1041_v37, %v271_v6  ;;  %v1004_v50 = vpop.f32.mrf.mxu0  ;;  %v1017_v25 = vpop.f32.mrf.mxu1 }
 0x2c0   :  { %2368 = vtanh.f32 %v1047_v33  ;;  %v1058_v58 = vmul.f32 0.5, %v1048_v13  ;;  %v281_v13 = vmul.f32 %v2886_v26, %v2906_v24 }
 0x2c1   :  { %v2365_v28 = vpop.eup %2364 }
 0x2c2   :  { %v2367_v49 = vpop.eup %2366  ;;  %v1051_v1 = vadd.f32 1.0, %v2365_v28  ;;  %2370 = vtanh.f32 %v1058_v58  ;;  %v285_v25 = vadd.f32 %v281_v13, %v2912_v40 }
 0x2c3   :  { %v1055_v48 = vadd.f32 1.0, %v2367_v49 }
 0x2c4   :  { %v1052_v27 = vmul.f32 0.5, %v1051_v1 }
 0x2c5   :  { %v1056_v39 = vmul.f32 0.5, %v1055_v48  ;;  %v1030_v59 = vpop.f32.mrf.mxu2  ;;  %v1043_v17 = vpop.f32.mrf.mxu3  ;;  %v282_v48 = vmul.f32 %v2886_v26, %v2916_v53 }
 0x2c6   :  { %v2369_v36 = vpop.eup %2368 }
 0x2c7   :  { %v1062_v14 = vmul.f32 %v1056_v39, %v3026_v52  ;;  %v1063_v61 = vmul.f32 %v2369_v36, %v1052_v27  ;;  %v280_v52 = vmul.f32 %v2886_v26, %v2904_v11  ;;  %v283_v27 = vmul.f32 %v2886_v26, %v2920_v57 }
 0x2c8   :  { %v2371_v5 = vpop.eup %2370  ;;  %v286_v17 = vadd.f32 %v282_v48, %v2925_v32 }
 0x2c9   :  { %v3070_v9 = vadd.f32 %v1063_v61, %v1062_v14  ;;  %v1060_v12 = vadd.f32 1.0, %v2371_v5  ;;  %v284_v50 = vadd.f32 %v280_v52, %v2909_v38  ;;  %v287_v36 = vadd.f32 %v283_v27, %v2929_v10 }
 0x2cb   :  { %2372 = vtanh.f32 %v3070_v9  ;;  %v1061_v6 = vmul.f32 0.5, %v1060_v12 }
 0x2d1   :  { %v2373_v34 = vpop.eup %2372 }
 0x2d2   :  { %v1066_v37 = vmul.f32 %v2373_v34, %v1061_v6 }
 0x2d4   :  { %v1071_v33 = vpack.c.bf16 %v1066_v37, %v1066_v37 }
 0x2d6   :  { %1080 = vmatmul.bf16.vlgmr.msrb.gmra.mxu0 %v1071_v33  ;;  %1093 = vmatmul.bf16.vlgmr.msrb.gmra.mxu1 %v1071_v33 }
 0x2d7   :  { %1106 = vmatmul.bf16.vlgmr.msrb.gmra.mxu2 %v1071_v33  ;;  %1119 = vmatmul.bf16.vlgmr.msrb.gmra.mxu3 %v1071_v33 }
 0x2d8   :  { %1230 = vmatpush.bf16.msrb.mxu0 %v2719_v41  ;;  %1243 = vmatpush.bf16.msrb.mxu1 %v2721_v42 }
 0x2d9   :  { %1256 = vmatpush.bf16.msrb.mxu2 %v2723_v43  ;;  %1269 = vmatpush.bf16.msrb.mxu3 %v2725_v47 }
 0x2dc   :  { %1231 = vmatpush.bf16.msrb.mxu0 %v2728_v54  ;;  %1244 = vmatpush.bf16.msrb.mxu1 %v2732_v55 }
 0x2dd   :  { %1257 = vmatpush.bf16.msrb.mxu2 %v2734_v56  ;;  %1270 = vmatpush.bf16.msrb.mxu3 %v2737_v60 }
 0x2e0   :  { %1232 = vmatpush.bf16.msrb.mxu0 %v2740_v2  ;;  %1245 = vmatpush.bf16.msrb.mxu1 %v2744_v3 }
 0x2e1   :  { %1258 = vmatpush.bf16.msrb.mxu2 %v2746_v4  ;;  %1271 = vmatpush.bf16.msrb.mxu3 %v2749_v8 }
 0x2e4   :  { %1233 = vmatpush.bf16.msrb.mxu0 %v2754_v15  ;;  %1246 = vmatpush.bf16.msrb.mxu1 %v2758_v18 }
 0x2e5   :  { %1259 = vmatpush.bf16.msrb.mxu2 %v2760_v19  ;;  %1272 = vmatpush.bf16.msrb.mxu3 %v2763_v23 }
 0x2e8   :  { %1234 = vmatpush.bf16.msrb.mxu0 %v2767_v29  ;;  %1247 = vmatpush.bf16.msrb.mxu1 %v2772_v30 }
 0x2e9   :  { %1260 = vmatpush.bf16.msrb.mxu2 %v2774_v31  ;;  %1273 = vmatpush.bf16.msrb.mxu3 %v2777_v35 }
 0x2ec   :  { %1235 = vmatpush.bf16.msrb.mxu0 %v2780_v44  ;;  %1248 = vmatpush.bf16.msrb.mxu1 %v2784_v45 }
 0x2ed   :  { %1261 = vmatpush.bf16.msrb.mxu2 %v2786_v46  ;;  %1274 = vmatpush.bf16.msrb.mxu3 %v2789_v51 }
 0x2f0   :  { %1236 = vmatpush.bf16.msrb.mxu0 %v2793_v62  ;;  %1249 = vmatpush.bf16.msrb.mxu1 %v2797_v63 }
 0x2f1   :  { %1262 = vmatpush.bf16.msrb.mxu2 %v2799_v0  ;;  %1275 = vmatpush.bf16.msrb.mxu3 %v2802_v7 }
 0x2f4   :  { %1237 = vmatpush.bf16.msrb.mxu0 %v2805_v16  ;;  %1250 = vmatpush.bf16.msrb.mxu1 %v2809_v20 }
 0x2f5   :  { %1263 = vmatpush.bf16.msrb.mxu2 %v2811_v21  ;;  %1276 = vmatpush.bf16.msrb.mxu3 %v2814_v22 }
 0x353   :  { %v1081_v58 = vpop.f32.mrf.mxu0  ;;  %v1094_v28 = vpop.f32.mrf.mxu1 }
 0x354   :  { %v1124_v49 = vadd.f32 %v1081_v58, %v284_v50  ;;  %v1125_v1 = vadd.f32 %v1094_v28, %v285_v25 }
 0x356   :  { %v1128_v39 = vmul.f32 0.5, %v1124_v49  ;;  %v1132_v59 = vmul.f32 0.5, %v1125_v1 }
 0x358   :  { %2374 = vtanh.f32 %v1128_v39 }
 0x359   :  { %2376 = vtanh.f32 %v1132_v59 }
 0x35a   :  { %v1107_v14 = vpop.f32.mrf.mxu2  ;;  %v1120_v61 = vpop.f32.mrf.mxu3 }
 0x35b   :  { %v1126_v5 = vadd.f32 %v1107_v14, %v286_v17  ;;  %v1127_v12 = vadd.f32 %v1120_v61, %v287_v36  ;;  %v1083_v6 = vpop.f32.mrf.mxu0  ;;  %v1096_v34 = vpop.f32.mrf.mxu1 }
 0x35d   :  { %2378 = vtanh.f32 %v1126_v5  ;;  %v1137_v37 = vmul.f32 0.5, %v1127_v12 }
 0x35e   :  { %v2375_v33 = vpop.eup %2374 }
 0x35f   :  { %v2377_v52 = vpop.eup %2376  ;;  %v1130_v13 = vadd.f32 1.0, %v2375_v33  ;;  %2380 = vtanh.f32 %v1137_v37 }
 0x360   :  { %v1134_v26 = vadd.f32 1.0, %v2377_v52 }
 0x361   :  { %v1131_v50 = vmul.f32 0.5, %v1130_v13 }
 0x362   :  { %v1135_v25 = vmul.f32 0.5, %v1134_v26  ;;  %v1109_v58 = vpop.f32.mrf.mxu2  ;;  %v1122_v28 = vpop.f32.mrf.mxu3 }
 0x363   :  { %v2379_v49 = vpop.eup %2378  ;;  %v2275_v28 = vld [vmem:[#allocation11 + $0x68] sm:$0xff] }
 0x364   :  { %v1141_v1 = vmul.f32 %v1135_v25, %v3070_v9  ;;  %v1142_v48 = vmul.f32 %v2379_v49, %v1131_v50  ;;  %v2277_v50 = vld [vmem:[#allocation11 + $0x78] sm:$0xff]  ;;  %v2276_v25 = vld [vmem:[#allocation11 + $0x70] sm:$0xff] }
 0x365   :  { %v2381_v27 = vpop.eup %2380 }
 0x366   :  { %v3118_v39 = vadd.f32 %v1142_v48, %v1141_v1  ;;  %v1139_v59 = vadd.f32 1.0, %v2381_v27  ;;  %v2274_v48 = vld [vmem:[#allocation11 + $0x60] sm:$0xff] }
 0x368   :  { %2382 = vtanh.f32 %v3118_v39  ;;  %v1140_v17 = vmul.f32 0.5, %v1139_v59 }
 0x36e   :  { %v2383_v36 = vpop.eup %2382 }
 0x36f   :  { %v1145_v14 = vmul.f32 %v2383_v36, %v1140_v17  ;;  %v2273_v36 = vld [vmem:[#allocation11 + $0x58] sm:$0xff] }
 0x371   :  { %v1150_v61 = vpack.c.bf16 %v1145_v14, %v1145_v14 }
 0x373   :  { %1159 = vmatmul.bf16.vlgmr.msra.gmra.mxu0 %v1150_v61  ;;  %1172 = vmatmul.bf16.vlgmr.msra.gmra.mxu1 %v1150_v61 }
 0x374   :  { %1185 = vmatmul.bf16.vlgmr.msra.gmra.mxu2 %v1150_v61  ;;  %1198 = vmatmul.bf16.vlgmr.msra.gmra.mxu3 %v1150_v61 }
 0x375   :  { %1309 = vmatpush.bf16.msra.mxu0 %v2719_v41  ;;  %1322 = vmatpush.bf16.msra.mxu1 %v2721_v42  ;;  %v3231_v41 = vld [vmem:[#allocation21_spill] sm:$0xff] }
 0x376   :  { %1335 = vmatpush.bf16.msra.mxu2 %v2723_v43  ;;  %1348 = vmatpush.bf16.msra.mxu3 %v2725_v47  ;;  %v296_v42 = vmul.f32 %v3231_v41, %v2904_v11  ;;  %v297_v43 = vmul.f32 %v3231_v41, %v2906_v24 }
 0x378   :  { %v300_v47 = vadd.f32 %v296_v42, %v2909_v38 }
 0x379   :  { %1310 = vmatpush.bf16.msra.mxu0 %v2728_v54  ;;  %1323 = vmatpush.bf16.msra.mxu1 %v2732_v55  ;;  %v301_v54 = vadd.f32 %v297_v43, %v2912_v40  ;;  %v2272_v43 = vld [vmem:[#allocation11 + $0x50] sm:$0xff] }
 0x37a   :  { %1336 = vmatpush.bf16.msra.mxu2 %v2734_v56  ;;  %1349 = vmatpush.bf16.msra.mxu3 %v2737_v60 }
 0x37d   :  { %1311 = vmatpush.bf16.msra.mxu0 %v2740_v2  ;;  %1324 = vmatpush.bf16.msra.mxu1 %v2744_v3  ;;  %v298_v3 = vmul.f32 %v3231_v41, %v2916_v53 }
 0x37e   :  { %1337 = vmatpush.bf16.msra.mxu2 %v2746_v4  ;;  %1350 = vmatpush.bf16.msra.mxu3 %v2749_v8  ;;  %v299_v4 = vmul.f32 %v3231_v41, %v2920_v57  ;;  %v2646_v8 = vmov 6  }
 0x37f   :  { %2321 = vset.pattern.permute.xlu1 %v2646_v8 }
 0x381   :  { %1312 = vmatpush.bf16.msra.mxu0 %v2754_v15  ;;  %1325 = vmatpush.bf16.msra.mxu1 %v2758_v18 }
 0x382   :  { %1338 = vmatpush.bf16.msra.mxu2 %v2760_v19  ;;  %1351 = vmatpush.bf16.msra.mxu3 %v2763_v23  ;;  %v2422_v19 = vld [vmem:[#allocation3] sm:$0xff]  ;;  %v302_v23 = vadd.f32 %v298_v3, %v2925_v32 }
 0x383   :  { %309 = vperm.xlu1 %2321, %v2422_v19  }
 0x385   :  { %1313 = vmatpush.bf16.msra.mxu0 %v2767_v29  ;;  %1326 = vmatpush.bf16.msra.mxu1 %v2772_v30  ;;  %v303_v29 = vadd.f32 %v299_v4, %v2929_v10 }
 0x386   :  { %1339 = vmatpush.bf16.msra.mxu2 %v2774_v31  ;;  %1352 = vmatpush.bf16.msra.mxu3 %v2777_v35 }
 0x389   :  { %1314 = vmatpush.bf16.msra.mxu0 %v2780_v44  ;;  %1327 = vmatpush.bf16.msra.mxu1 %v2784_v45 }
 0x38a   :  { %1340 = vmatpush.bf16.msra.mxu2 %v2786_v46  ;;  %1353 = vmatpush.bf16.msra.mxu3 %v2789_v51 }
 0x38d   :  { %1315 = vmatpush.bf16.msra.mxu0 %v2793_v62  ;;  %1328 = vmatpush.bf16.msra.mxu1 %v2797_v63 }
 0x38e   :  { %1341 = vmatpush.bf16.msra.mxu2 %v2799_v0  ;;  %1354 = vmatpush.bf16.msra.mxu3 %v2802_v7 }
 0x391   :  { %1316 = vmatpush.bf16.msra.mxu0 %v2805_v16  ;;  %1329 = vmatpush.bf16.msra.mxu1 %v2809_v20 }
 0x392   :  { %1342 = vmatpush.bf16.msra.mxu2 %v2811_v21  ;;  %1355 = vmatpush.bf16.msra.mxu3 %v2814_v22 }
 0x3f0   :  { %v1160_v55 = vpop.f32.mrf.mxu0  ;;  %v1173_v56 = vpop.f32.mrf.mxu1 }
 0x3f1   :  { %v1203_v60 = vadd.f32 %v1160_v55, %v300_v47  ;;  %v1204_v2 = vadd.f32 %v1173_v56, %v301_v54 }
 0x3f3   :  { %v1207_v15 = vmul.f32 0.5, %v1203_v60  ;;  %v1211_v18 = vmul.f32 0.5, %v1204_v2  ;;  %v2271_v60 = vld [vmem:[#allocation11 + $0x48] sm:$0xff] }
 0x3f5   :  { %2384 = vtanh.f32 %v1207_v15  ;;  %v310_v58 = vpop.permute.xlu1 %309 }
 0x3f6   :  { %2386 = vtanh.f32 %v1211_v18  ;;  %v312_v49 = vmul.f32 %v310_v58, %v2904_v11  ;;  %v313_v1 = vmul.f32 %v310_v58, %v2906_v24  ;;  %v314_v41 = vmul.f32 %v310_v58, %v2916_v53 }
 0x3f7   :  { %v1186_v30 = vpop.f32.mrf.mxu2  ;;  %v1199_v31 = vpop.f32.mrf.mxu3  ;;  %v315_v42 = vmul.f32 %v310_v58, %v2920_v57 }
 0x3f8   :  { %v1205_v35 = vadd.f32 %v1186_v30, %v302_v23  ;;  %v1206_v44 = vadd.f32 %v1199_v31, %v303_v29  ;;  %v1162_v45 = vpop.f32.mrf.mxu0  ;;  %v1175_v46 = vpop.f32.mrf.mxu1  ;;  %v316_v27 = vadd.f32 %v312_v49, %v2909_v38  ;;  %v318_v55 = vadd.f32 %v314_v41, %v2925_v32  ;;  %v2270_v23 = vld [vmem:[#allocation11 + $0x40] sm:$0xff] }
 0x3f9   :  { %v319_v56 = vadd.f32 %v315_v42, %v2929_v10  ;;  %v2262_v49 = vld [vmem:[#allocation11] sm:$0xff] }
 0x3fa   :  { %2388 = vtanh.f32 %v1205_v35  ;;  %v1216_v51 = vmul.f32 0.5, %v1206_v44 }
 0x3fb   :  { %v2385_v62 = vpop.eup %2384 }
 0x3fc   :  { %v2387_v63 = vpop.eup %2386  ;;  %v1209_v0 = vadd.f32 1.0, %v2385_v62  ;;  %2390 = vtanh.f32 %v1216_v51 }
 0x3fd   :  { %v1213_v7 = vadd.f32 1.0, %v2387_v63 }
 0x3fe   :  { %v1210_v16 = vmul.f32 0.5, %v1209_v0 }
 0x3ff   :  { %v1214_v20 = vmul.f32 0.5, %v1213_v7  ;;  %v1188_v21 = vpop.f32.mrf.mxu2  ;;  %v1201_v22 = vpop.f32.mrf.mxu3 }
 0x400   :  { %v2389_v9 = vpop.eup %2388 }
 0x401   :  { %v1220_v5 = vmul.f32 %v1214_v20, %v3118_v39  ;;  %v1221_v12 = vmul.f32 %v2389_v9, %v1210_v16  ;;  %v317_v39 = vadd.f32 %v313_v1, %v2912_v40 }
 0x402   :  { %v2391_v6 = vpop.eup %2390 }
 0x403   :  { %v1222_v34 = vadd.f32 %v1221_v12, %v1220_v5  ;;  %v1218_v37 = vadd.f32 1.0, %v2391_v6  ;;  %v3232_v12 = vld [vmem:[#allocation23_spill] sm:$0xff] }
 0x404   :  { %v1400_v6 = vpack.c.bf16 %v3232_v12, %v3232_v12 }
 0x405   :  { %2392 = vtanh.f32 %v1222_v34  ;;  %v1219_v33 = vmul.f32 0.5, %v1218_v37  ;;  %v2268_v37 = vld [vmem:[#allocation11 + $0x30] sm:$0xff] }
 0x40b   :  { %v2393_v52 = vpop.eup %2392 }
 0x40c   :  { %v1224_v13 = vmul.f32 %v2393_v52, %v1219_v33  ;;  %v2267_v33 = vld [vmem:[#allocation11 + $0x28] sm:$0xff]  ;;  %v2266_v52 = vld [vmem:[#allocation11 + $0x20] sm:$0xff] }
 0x40e   :  { %v1229_v26 = vpack.c.bf16 %v1224_v13, %v1224_v13  ;;  %v2265_v13 = vld [vmem:[#allocation11 + $0x18] sm:$0xff] }
 0x410   :  { %1238 = vmatmul.bf16.vlgmr.msrb.gmra.mxu0 %v1229_v26  ;;  %1251 = vmatmul.bf16.vlgmr.msrb.gmra.mxu1 %v1229_v26 }
 0x411   :  { %1264 = vmatmul.bf16.vlgmr.msrb.gmra.mxu2 %v1229_v26  ;;  %1277 = vmatmul.bf16.vlgmr.msrb.gmra.mxu3 %v1229_v26  ;;  %v2264_v26 = vld [vmem:[#allocation11 + $0x10] sm:$0xff] }
 0x412   :  { %1465 = vmatpush.bf16.msrb.mxu0 %v2277_v50  ;;  %v2263_v50 = vld [vmem:[#allocation11 + $0x8] sm:$0xff] }
 0x416   :  { %1466 = vmatpush.bf16.msrb.mxu0 %v2276_v25  ;;  %v3233_v25 = vld [vmem:[#allocation22_spill] sm:$0xff] }
 0x417   :  { %v328_v58 = vmul.f32 %v3233_v25, %v2904_v11  ;;  %v331_v11 = vmul.f32 %v3233_v25, %v2920_v57 }
 0x419   :  { %v332_v1 = vadd.f32 %v328_v58, %v2909_v38  ;;  %v335_v38 = vadd.f32 %v331_v11, %v2929_v10  ;;  %v2280_v58 = vld [vmem:[#allocation12 + $0x10] sm:$0xff] }
 0x41a   :  { %1467 = vmatpush.bf16.msrb.mxu0 %v2275_v28  ;;  %v329_v28 = vmul.f32 %v3233_v25, %v2906_v24 }
 0x41e   :  { %1468 = vmatpush.bf16.msrb.mxu0 %v2274_v48  ;;  %v333_v48 = vadd.f32 %v329_v28, %v2912_v40 }
 0x422   :  { %1469 = vmatpush.bf16.msrb.mxu0 %v2273_v36  ;;  %v330_v36 = vmul.f32 %v3233_v25, %v2916_v53  ;;  %v2281_v25 = vld [vmem:[#allocation12 + $0x18] sm:$0xff] }
 0x424   :  { %v334_v24 = vadd.f32 %v330_v36, %v2925_v32 }
 0x426   :  { %1470 = vmatpush.bf16.msrb.mxu0 %v2272_v43 }
 0x42a   :  { %1471 = vmatpush.bf16.msrb.mxu0 %v2271_v60 }
 0x42e   :  { %1472 = vmatpush.bf16.msrb.mxu0 %v2270_v23 }
 0x48d   :  { %v1239_v59 = vpop.f32.mrf.mxu0  ;;  %v1252_v17 = vpop.f32.mrf.mxu1 }
 0x48e   :  { %v1282_v14 = vadd.f32 %v1239_v59, %v316_v27  ;;  %v1283_v61 = vadd.f32 %v1252_v17, %v317_v39 }
 0x490   :  { %v1286_v47 = vmul.f32 0.5, %v1282_v14  ;;  %v1290_v54 = vmul.f32 0.5, %v1283_v61 }
 0x492   :  { %2394 = vtanh.f32 %v1286_v47 }
 0x493   :  { %2396 = vtanh.f32 %v1290_v54 }
 0x494   :  { %v1265_v2 = vpop.f32.mrf.mxu2  ;;  %v1278_v3 = vpop.f32.mrf.mxu3 }
 0x495   :  { %v1284_v4 = vadd.f32 %v1265_v2, %v318_v55  ;;  %v1285_v8 = vadd.f32 %v1278_v3, %v319_v56  ;;  %v1241_v15 = vpop.f32.mrf.mxu0  ;;  %v1254_v18 = vpop.f32.mrf.mxu1 }
 0x497   :  { %2398 = vtanh.f32 %v1284_v4  ;;  %v1295_v19 = vmul.f32 0.5, %v1285_v8 }
 0x498   :  { %v2395_v29 = vpop.eup %2394 }
 0x499   :  { %v2397_v30 = vpop.eup %2396  ;;  %v1288_v31 = vadd.f32 1.0, %v2395_v29  ;;  %2400 = vtanh.f32 %v1295_v19 }
 0x49a   :  { %v1292_v35 = vadd.f32 1.0, %v2397_v30 }
 0x49b   :  { %v1289_v44 = vmul.f32 0.5, %v1288_v31 }
 0x49c   :  { %v1293_v45 = vmul.f32 0.5, %v1292_v35  ;;  %v1267_v46 = vpop.f32.mrf.mxu2  ;;  %v1280_v51 = vpop.f32.mrf.mxu3 }
 0x49d   :  { %v2399_v62 = vpop.eup %2398  ;;  %v3192_v46 = vld [vmem:[#allocation9] sm:$0xff] }
 0x49e   :  { %v1299_v63 = vmul.f32 %v1293_v45, %v1222_v34  ;;  %v1300_v0 = vmul.f32 %v2399_v62, %v1289_v44  ;;  %v2269_v34 = vld [vmem:[#allocation11 + $0x38] sm:$0xff]  ;;  %v1539_v51 = vperm.slane %v3192_v46, 4 }
 0x49f   :  { %v2401_v7 = vpop.eup %2400  ;;  %1526 = vmatpush.bf16.msrb.mxu1 %v2269_v34 }
 0x4a0   :  { %v3174_v16 = vadd.f32 %v1300_v0, %v1299_v63  ;;  %v1297_v20 = vadd.f32 1.0, %v2401_v7 }
 0x4a2   :  { %2402 = vtanh.f32 %v3174_v16  ;;  %v1298_v21 = vmul.f32 0.5, %v1297_v20 }
 0x4a3   :  { %1527 = vmatpush.bf16.msrb.mxu1 %v2268_v37  ;;  %v2285_v37 = vld [vmem:[#allocation12 + $0x38] sm:$0xff] }
 0x4a4   :  { %1656 = vmatpush.bf16.msrb.mxu2 %v2285_v37 }
 0x4a7   :  { %1528 = vmatpush.bf16.msrb.mxu1 %v2267_v33  ;;  %v2284_v33 = vld [vmem:[#allocation12 + $0x30] sm:$0xff] }
 0x4a8   :  { %v2403_v22 = vpop.eup %2402  ;;  %1657 = vmatpush.bf16.msrb.mxu2 %v2284_v33  ;;  %v2286_v33 = vld [vmem:[#allocation14] sm:$0xff] }
 0x4a9   :  { %v1303_v9 = vmul.f32 %v2403_v22, %v1298_v21 }
 0x4ab   :  { %v1308_v5 = vpack.c.bf16 %v1303_v9, %v1303_v9  ;;  %1529 = vmatpush.bf16.msrb.mxu1 %v2266_v52  ;;  %v2647_v9 = vmov 0.0   ;;  %v2283_v52 = vld [vmem:[#allocation12 + $0x28] sm:$0xff] }
 0x4ac   :  { %1658 = vmatpush.bf16.msrb.mxu2 %v2283_v52 }
 0x4ad   :  { %1317 = vmatmul.bf16.vlgmr.msra.gmra.mxu0 %v1308_v5  ;;  %1330 = vmatmul.bf16.vlgmr.msra.gmra.mxu1 %v1308_v5 }
 0x4ae   :  { %1343 = vmatmul.bf16.vlgmr.msra.gmra.mxu2 %v1308_v5  ;;  %1356 = vmatmul.bf16.vlgmr.msra.gmra.mxu3 %v1308_v5 }
 0x4af   :  { %1530 = vmatpush.bf16.msrb.mxu1 %v2265_v13 }
 0x4b3   :  { %1531 = vmatpush.bf16.msrb.mxu1 %v2264_v26  ;;  %v2282_v26 = vld [vmem:[#allocation12 + $0x20] sm:$0xff] }
 0x4b4   :  { %1659 = vmatpush.bf16.msrb.mxu2 %v2282_v26 }
 0x4b7   :  { %1532 = vmatpush.bf16.msrb.mxu1 %v2263_v50 }
 0x4b8   :  { %1660 = vmatpush.bf16.msrb.mxu2 %v2281_v25 }
 0x4bb   :  { %1533 = vmatpush.bf16.msrb.mxu1 %v2262_v49 }
 0x4bc   :  { %1661 = vmatpush.bf16.msrb.mxu2 %v2280_v58 }
 0x4bd   :  { %1473 = vmatmul.bf16.vlgmr.msrb.gmra.mxu0 %v1400_v6 }
 0x52a   :  { %v1318_v27 = vpop.f32.mrf.mxu0  ;;  %v1331_v39 = vpop.f32.mrf.mxu1 }
 0x52b   :  { %v1361_v59 = vadd.f32 %v1318_v27, %v332_v1  ;;  %v1362_v17 = vadd.f32 %v1331_v39, %v333_v48  ;;  %v2279_v48 = vld [vmem:[#allocation12 + $0x8] sm:$0xff] }
 0x52c   :  { %1662 = vmatpush.bf16.msrb.mxu2 %v2279_v48 }
 0x52d   :  { %v1365_v14 = vmul.f32 0.5, %v1361_v59  ;;  %v1369_v61 = vmul.f32 0.5, %v1362_v17  ;;  %v2278_v59 = vld [vmem:[#allocation12] sm:$0xff] }
 0x52f   :  { %2404 = vtanh.f32 %v1365_v14 }
 0x530   :  { %2406 = vtanh.f32 %v1369_v61  ;;  %1663 = vmatpush.bf16.msrb.mxu2 %v2278_v59 }
 0x531   :  { %v1344_v40 = vpop.f32.mrf.mxu2  ;;  %v1357_v41 = vpop.f32.mrf.mxu3 }
 0x532   :  { %v1363_v42 = vadd.f32 %v1344_v40, %v334_v24  ;;  %v1364_v43 = vadd.f32 %v1357_v41, %v335_v38  ;;  %v1320_v47 = vpop.f32.mrf.mxu0  ;;  %v1333_v54 = vpop.f32.mrf.mxu1 }
 0x534   :  { %2408 = vtanh.f32 %v1363_v42  ;;  %v1374_v55 = vmul.f32 0.5, %v1364_v43 }
 0x535   :  { %v2405_v53 = vpop.eup %2404 }
 0x536   :  { %v2407_v56 = vpop.eup %2406  ;;  %v1367_v60 = vadd.f32 1.0, %v2405_v53  ;;  %2410 = vtanh.f32 %v1374_v55 }
 0x537   :  { %v1371_v57 = vadd.f32 1.0, %v2407_v56  ;;  %v3202_v56 = vld [vmem:[#allocation9 + $0x8] sm:$0xff] }
 0x538   :  { %v1368_v2 = vmul.f32 0.5, %v1367_v60  ;;  %v1584_v60 = vperm.slane %v3202_v56, 4 }
 0x539   :  { %v1372_v3 = vmul.f32 0.5, %v1371_v57  ;;  %v1346_v4 = vpop.f32.mrf.mxu2  ;;  %v1359_v8 = vpop.f32.mrf.mxu3 }
 0x53a   :  { %v2409_v32 = vpop.eup %2408  ;;  %v1474_v15 = vpop.f32.mrf.mxu0 }
 0x53b   :  { %v1378_v10 = vmul.f32 %v1372_v3, %v3174_v16  ;;  %v1379_v18 = vmul.f32 %v2409_v32, %v1368_v2  ;;  %v1541_v16 = vlaneseq  ;;  %v3205_v3 = vld [vmem:[#allocation9 + $0x10] sm:$0xff] }
 0x53c   :  { %v2411_v19 = vpop.eup %2410  ;;  %v1586_v4 = vperm.slane %v3205_v3, 4 }
 0x53d   :  { %v1380_v23 = vadd.f32 %v1379_v18, %v1378_v10  ;;  %v1376_v29 = vadd.f32 1.0, %v2411_v19  ;;  %v1542_v20 = vand.u32 127, %v1541_v16  ;;  %v1607_v19 = vperm.slane %v3192_v46, 5  ;;  %v2290_v16 = vld [vmem:[#allocation14 + $0x20] sm:$0xff] }
 0x53f   :  { %2412 = vtanh.f32 %v1380_v23  ;;  %v1377_v31 = vmul.f32 0.5, %v1376_v29  ;;  %vm1543_vm0 = vcmp.lt.s32.totalorder %v1542_v20, 32 }
 0x540   :  { %v3198_v5 = vsel %vm1543_vm0, 1.0, %v2647_v9 }
 0x542   :  { %v1476_v30 = vpop.f32.mrf.mxu0 }
 0x545   :  { %v2413_v35 = vpop.eup %2412 }
 0x546   :  { %v1382_v44 = vmul.f32 %v2413_v35, %v1377_v31 }
 0x548   :  { %v1383_v45 = vpack.c.bf16 %v1382_v44, %v1382_v44 }
 0x54a   :  { %1534 = vmatmul.bf16.vlgmr.msrb.gmra.mxu1 %v1383_v45 }
 0x5c7   :  { %v1535_v62 = vpop.f32.mrf.mxu1 }
 0x5c8   :  { %v1536_v63 = vadd.f32 %v1535_v62, %v1474_v15  ;;  %v2293_v62 = vld [vmem:[#allocation14 + $0x38] sm:$0xff] }
 0x5c9   :  { %1779 = vmatpush.bf16.msrb.mxu3 %v2293_v62 }
 0x5ca   :  { %v3195_v0 = vadd.f32 %v1539_v51, %v1536_v63  ;;  %v2292_v63 = vld [vmem:[#allocation14 + $0x30] sm:$0xff] }
 0x5cc   :  { %1546 = vadd.xlane.f32.xlu0 %v3195_v0 }
 0x5cd   :  { %1780 = vmatpush.bf16.msrb.mxu3 %v2292_v63 }
 0x5cf   :  { %v1537_v7 = vpop.f32.mrf.mxu1 }
 0x63f   :  { %v1547_v21 = vpop.xlane.xlu0 %1546 }
 0x640   :  { %v1548_v22 = vmul.f32 0.03125, %v1547_v21  ;;  %v2289_v21 = vld [vmem:[#allocation14 + $0x18] sm:$0xff] }
 0x642   :  { %v1549_v12 = vsub.f32 %v3195_v0, %v1548_v22  ;;  %v2288_v22 = vld [vmem:[#allocation14 + $0x10] sm:$0xff] }
 0x644   :  { %v1550_v6 = vmul.f32 %v3198_v5, %v1549_v12 }
 0x646   :  { %v1551_v34 = vmul.f32 %v1550_v6, %v1550_v6 }
 0x648   :  { %1552 = vadd.xlane.f32.xlu1 %v1551_v34 }
 0x6bb   :  { %v1553_v13 = vpop.xlane.xlu1 %1552 }
 0x6bc   :  { %v1554_v50 = vmul.f32 0.032258064, %v1553_v13 }
 0x6be   :  { %2414 = vrsqrt.f32 %v1554_v50  ;;  %vm1562_vm1 = vcmp.eq.f32.partialorder %v1554_v50, inf  ;;  %v1565_v11 = vand.u32 2147483648, %v1554_v50  ;;  %vm1564_vm2 = vcmp.eq.f32.partialorder %v1554_v50, 0.0 }
 0x6c4   :  { %v2415_v28 = vpop.eup %2414 }
 0x6c5   :  { %v1556_v49 = vmul.f32 %v2415_v28, %v1554_v50 }
 0x6c7   :  { %v1557_v1 = vmul.f32 %v2415_v28, %v1556_v49 }
 0x6c9   :  { %v1558_v27 = vmul.f32 0.5, %v1557_v1 }
 0x6cb   :  { %v1559_v39 = vsub.f32 1.5, %v1558_v27 }
 0x6cd   :  { %v1560_v17 = vmul.f32 %v2415_v28, %v1559_v39 }
 0x6cf   :  { %v1561_v36 = vmul.f32 %v1560_v17, %v1554_v50 }
 0x6d1   :  { %v1563_v14 = vsel %vm1562_vm1, %v1554_v50, %v1561_v36 }
 0x6d2   :  { %v1566_v61 = vsel %vm1564_vm2, %v1565_v11, %v1563_v14  ;;  %v1707_v11 = vperm.slane %v3202_v56, 5 }
 0x6d3   :  { %v1567_v24 = vadd.f32 1e-06, %v1566_v61 }
 0x6d5   :  { %2416 = vrcp.f32 %v1567_v24  ;;  %v1579_v42 = vand.u32 2147483648, %v1567_v24  ;;  %v1577_v47 = vand.u32 2147483647, %v1567_v24  ;;  %vm1573_vm4 = vweird.f32 %v1567_v24 }
 0x6d7   :  { %v1580_v55 = vor.u32 1.1754944e-38, %v1579_v42  ;;  %vm1578_vm6 = vcmp.eq.f32.partialorder %v1577_v47, 8.507059e+37  ;;  %v1730_v47 = vperm.slane %v3192_v46, 6 }
 0x6db   :  { %v2417_v38 = vpop.eup %2416 }
 0x6dc   :  { %v1569_v40 = vmul.f32 %v2417_v38, %v1567_v24  ;;  %vm1574_vm3 = vweird.f32 %v2417_v38  ;;  %v1709_v24 = vperm.slane %v3205_v3, 5 }
 0x6dd   :  { %vm1575_vm5 = vmor %vm1573_vm4, %vm1574_vm3 }
 0x6de   :  { %v1570_v41 = vsub.f32 1.0, %v1569_v40 }
 0x6e0   :  { %v1571_v43 = vmul.f32 %v2417_v38, %v1570_v41 }
 0x6e2   :  { %v1572_v54 = vadd.f32 %v2417_v38, %v1571_v43 }
 0x6e4   :  { %v1576_v53 = vsel %vm1575_vm5, %v2417_v38, %v1572_v54 }
 0x6e5   :  { %v1581_v57 = vsel %vm1578_vm6, %v1580_v55, %v1576_v53 }
 0x6e6   :  { %v1583_v2 = vmul.f32 %v1581_v57, %v1549_v12 }
 0x6e8   :  { %v1585_v8 = vmul.f32 %v1584_v60, %v1583_v2 }
 0x6ea   :  { %v1587_v32 = vadd.f32 %v1586_v4, %v1585_v8 }
 0x6ec   :  { %v1588_v15 = vadd.f32 %v1587_v32, %v3195_v0  ;;  %v2291_v0 = vld [vmem:[#allocation14 + $0x28] sm:$0xff] }
 0x6ed   :  { %1781 = vmatpush.bf16.msrb.mxu3 %v2291_v0 }
 0x6ee   :  { %v1589_v10 = vmax.f32 %v1588_v15, 0.0 }
 0x6f0   :  { %v1590_v18 = vpack.c.bf16 %v1589_v10, %v1589_v10 }
 0x6f1   :  { %1782 = vmatpush.bf16.msrb.mxu3 %v2290_v16 }
 0x6f2   :  { %1664 = vmatmul.bf16.vlgmr.msrb.gmra.mxu2 %v1590_v18 }
 0x6f5   :  { %1783 = vmatpush.bf16.msrb.mxu3 %v2289_v21 }
 0x6f9   :  { %1784 = vmatpush.bf16.msrb.mxu3 %v2288_v22 }
 0x775   :  { %v1665_v23 = vpop.f32.mrf.mxu2 }
 0x776   :  { %v1666_v29 = vadd.f32 %v1665_v23, %v1607_v19 }
 0x778   :  { %1669 = vadd.xlane.f32.xlu2 %v1666_v29 }
 0x77d   :  { %v1667_v30 = vpop.f32.mrf.mxu2 }
 0x7eb   :  { %v1670_v31 = vpop.xlane.xlu2 %1669 }
 0x7ec   :  { %v1671_v35 = vmul.f32 0.03125, %v1670_v31 }
 0x7ee   :  { %v1672_v44 = vsub.f32 %v1666_v29, %v1671_v35 }
 0x7f0   :  { %v1673_v45 = vmul.f32 %v3198_v5, %v1672_v44  ;;  %v2287_v5 = vld [vmem:[#allocation14 + $0x8] sm:$0xff] }
 0x7f1   :  { %1785 = vmatpush.bf16.msrb.mxu3 %v2287_v5 }
 0x7f2   :  { %v1674_v51 = vmul.f32 %v1673_v45, %v1673_v45 }
 0x7f4   :  { %1675 = vadd.xlane.f32.xlu2 %v1674_v51 }
 0x7f5   :  { %1786 = vmatpush.bf16.msrb.mxu3 %v2286_v33 }
 0x867   :  { %v1676_v7 = vpop.xlane.xlu2 %1675 }
 0x868   :  { %v1677_v20 = vmul.f32 0.032258064, %v1676_v7 }
 0x86a   :  { %2418 = vrsqrt.f32 %v1677_v20  ;;  %vm1685_vm7 = vcmp.eq.f32.partialorder %v1677_v20, inf  ;;  %v1688_v26 = vand.u32 2147483648, %v1677_v20  ;;  %vm1687_vm8 = vcmp.eq.f32.partialorder %v1677_v20, 0.0 }
 0x870   :  { %v2419_v9 = vpop.eup %2418 }
 0x871   :  { %v1679_v12 = vmul.f32 %v2419_v9, %v1677_v20 }
 0x873   :  { %v1680_v6 = vmul.f32 %v2419_v9, %v1679_v12 }
 0x875   :  { %v1681_v34 = vmul.f32 0.5, %v1680_v6 }
 0x877   :  { %v1682_v37 = vsub.f32 1.5, %v1681_v34 }
 0x879   :  { %v1683_v52 = vmul.f32 %v2419_v9, %v1682_v37 }
 0x87b   :  { %v1684_v13 = vmul.f32 %v1683_v52, %v1677_v20 }
 0x87d   :  { %v1686_v50 = vsel %vm1685_vm7, %v1677_v20, %v1684_v13 }
 0x87e   :  { %v1689_v25 = vsel %vm1687_vm8, %v1688_v26, %v1686_v50 }
 0x87f   :  { %v1690_v58 = vadd.f32 1e-06, %v1689_v25 }
 0x881   :  { %2420 = vrcp.f32 %v1690_v58  ;;  %v1702_v48 = vand.u32 2147483648, %v1690_v58  ;;  %v1700_v39 = vand.u32 2147483647, %v1690_v58  ;;  %vm1696_vm10 = vweird.f32 %v1690_v58 }
 0x883   :  { %v1703_v17 = vor.u32 1.1754944e-38, %v1702_v48  ;;  %vm1701_vm12 = vcmp.eq.f32.partialorder %v1700_v39, 8.507059e+37 }
 0x887   :  { %v2421_v28 = vpop.eup %2420 }
 0x888   :  { %v1692_v49 = vmul.f32 %v2421_v28, %v1690_v58  ;;  %vm1697_vm9 = vweird.f32 %v2421_v28 }
 0x889   :  { %vm1698_vm11 = vmor %vm1696_vm10, %vm1697_vm9 }
 0x88a   :  { %v1693_v1 = vsub.f32 1.0, %v1692_v49 }
 0x88c   :  { %v1694_v27 = vmul.f32 %v2421_v28, %v1693_v1 }
 0x88e   :  { %v1695_v59 = vadd.f32 %v2421_v28, %v1694_v27 }
 0x890   :  { %v1699_v36 = vsel %vm1698_vm11, %v2421_v28, %v1695_v59 }
 0x891   :  { %v1704_v14 = vsel %vm1701_vm12, %v1703_v17, %v1699_v36 }
 0x892   :  { %v1706_v61 = vmul.f32 %v1704_v14, %v1672_v44 }
 0x894   :  { %v1708_v38 = vmul.f32 %v1707_v11, %v1706_v61 }
 0x896   :  { %v1710_v40 = vadd.f32 %v1709_v24, %v1708_v38 }
 0x898   :  { %v1711_v41 = vadd.f32 %v1710_v40, %v1666_v29 }
 0x89a   :  { %v1712_v42 = vmax.f32 %v1711_v41, 0.0 }
 0x89c   :  { %v1713_v43 = vpack.c.bf16 %v1712_v42, %v1712_v42 }
 0x89e   :  { %1787 = vmatmul.bf16.vlgmr.msrb.gmra.mxu3 %v1713_v43 }
 0x921   :  { %v1788_v54 = vpop.f32.mrf.mxu3 }
 0x922   :  { %v1789_v55 = vadd.f32 %v1788_v54, %v1730_v47 }
 0x924   :  { %1792 = vst [vmem:[#allocation15] sm:$0xff] %v1789_v55 }
 0x925   :  { %1803 = dma.vmem_to_hbm [thread:$0]  %s1799_s6, 128, %s1801_s1, [#allocation5]  }
 0x929   :  { %v1790_v53 = vpop.f32.mrf.mxu3 }
 0x92a   :  { %2626 = dma.done.wait [#allocation5], 128  }
 0x92b   :  { %2627 = vsyncadd [#allocation5], 4294967168 }
 0x92c   :  { %1808 = vsyncpa [#allocation4], 1 }
 0x92d   :  { %1809 = vsyncpa [#allocation7], 1 }
 0x92e   :  { %1810 = vsyncpa [#allocation10], 1 }
 0x92f   :  { %1811 = vsyncpa [#allocation13], 1 }
 0x930   :  { %1812 = vsyncpa [#allocation5], 1 }

</bundles_post_ra>
